<compile_context>
chip_gen: v7x
topology: tpu7x:2x2x1
jax: 0.10.0
libtpu: 0.0.40
codegen_flags: <defaults>
</compile_context>

<pallas_src>
import jax
import jax.numpy as jnp
import numpy as np
from jax.experimental import pallas as pl
from jax.experimental.pallas import tpu as pltpu


def _round_up(n, m):
    return ((n + m - 1) // m) * m


# ----------------------------- Pallas kernels ------------------------------

def _fused_down_up_kernel(xph_ref, wd_ref, bd_ref, wu_ref, bu_ref,
                          z_ref, stats_ref, rp_ref):
    """Fused: LeakyReLU -> stride-2 conv -> ReLU -> sub-pixel ConvT -> BN partial sums.

    xph_ref : (1, Ho+1, Wo+1, 4*Cp) bf16   phase-decomposed, zero-padded input sample
    wd_ref  : (16*Cp, Ip)           bf16   packed down-conv weights
    bd_ref  : (1, Ip)               f32
    wu_ref  : (4, 4*Ip, Op)         bf16   packed up-conv weights, one per output phase
    bu_ref  : (1, Op)               f32
    z_ref   : (1, 4, Ho*Wo, Op)     f32    un-normalized ConvT output (per phase)
    stats_ref: (2, Op)              f32    [sum; sum_sq] accumulated over the batch axis
    rp_ref  : (Ho+2, Wo+2, Ip)      f32    VMEM scratch: zero-padded ReLU(D)
    """
    n = pl.program_id(0)
    Hp, Wp = xph_ref.shape[1], xph_ref.shape[2]
    Ho, Wo = Hp - 1, Wp - 1
    M = Ho * Wo
    Ip = rp_ref.shape[2]
    Op = z_ref.shape[3]
    k_dn = 4 * xph_ref.shape[3]
    k_up = 4 * Ip

    # Init persistent state once (batch axis is "arbitrary" -> sequential).
    @pl.when(n == 0)
    def _():
        stats_ref[...] = jnp.zeros_like(stats_ref)
        rp_ref[...] = jnp.zeros_like(rp_ref)   # border stays zero forever

    # ---- LeakyReLU(0.2) on the phase-stacked padded input (leaky(0)=0 keeps padding valid).
    xv = xph_ref[0].astype(jnp.float32)
    xv = jnp.where(xv >= 0.0, xv, 0.2 * xv)

    # ---- down conv: build the im2col in VMEM from 4 shifted slices, one MXU matmul.
    a = jnp.concatenate(
        [xv[dh:dh + Ho, dw:dw + Wo, :] for dh in (0, 1) for dw in (0, 1)],
        axis=-1).reshape(M, k_dn).astype(jnp.bfloat16)
    d = jnp.dot(a, wd_ref[...], preferred_element_type=jnp.float32) + bd_ref[...]

    # ---- ReLU, stash into zero-padded VMEM scratch (D never touches HBM).
    rp_ref[1:Ho + 1, 1:Wo + 1, :] = jnp.maximum(d, 0.0).reshape(Ho, Wo, Ip)
    rpv = rp_ref[...]

    # ---- transposed conv (k4,s2,p1) as 4 sub-pixel matmuls + BN partial sums.
    psum = jnp.zeros((1, Op), jnp.float32)
    psq = jnp.zeros((1, Op), jnp.float32)
    for ph in (0, 1):
        for pw in (0, 1):
            bmat = jnp.concatenate(
                [rpv[ph + da:ph + da + Ho, pw + db:pw + db + Wo, :]
                 for da in (0, 1) for db in (0, 1)],
                axis=-1).reshape(M, k_up).astype(jnp.bfloat16)
            zph = jnp.dot(bmat, wu_ref[ph * 2 + pw],
                          preferred_element_type=jnp.float32) + bu_ref[...]
            z_ref[0, ph * 2 + pw] = zph
            psum = psum + jnp.sum(zph, axis=0, keepdims=True)
            psq = psq + jnp.sum(zph * zph, axis=0, keepdims=True)

    stats_ref[...] += jnp.concatenate([psum, psq], axis=0)


def _bn_affine_kernel(z_ref, scale_ref, shift_ref, y_ref):
    """Second (lane-dense) pass: y = z * scale + shift with precomputed BN affine."""
    y_ref[...] = z_ref[...] * scale_ref[...] + shift_ref[...]


# ------------------------------- JAX wrapper --------------------------------

def unet_skip_innermost(x, params):
    """x: (N, C, H, W) float32;  returns (N, 2*C, H, W)."""
    Wd, bd, Wu, bu, gamma, beta = params
    N, C, H, W = x.shape
    inner = Wd.shape[0]
    outer = Wu.shape[1]
    assert H % 2 == 0 and W % 2 == 0
    Ho, Wo = H // 2, W // 2
    M = Ho * Wo

    # Channel padding for lane-dense MXU / stores (no-op at real UNet widths >=128).
    C4p = _round_up(4 * C, 128)
    Cp = C4p // 4
    Ip = _round_up(inner, 128)
    Op = _round_up(outer, 128)

    # ---- layout prep (~1x data, pure index plumbing): phase-decompose the padded input.
    # P[ph,pw][n,a,b,c] = pad(x,1)[n, 2a+ph, 2b+pw, c]
    x_nhwc = jnp.transpose(x, (0, 2, 3, 1)).astype(jnp.float32)
    xpad = jnp.pad(x_nhwc, ((0, 0), (1, 1), (1, 1), (0, 0)))
    ph_planes = jnp.stack(
        [xpad[:, ph::2, pw::2, :] for ph in (0, 1) for pw in (0, 1)], axis=3)
    ph_planes = jnp.pad(ph_planes, ((0, 0),) * 4 + ((0, Cp - C),))
    xph = ph_planes.reshape(N, Ho + 1, Wo + 1, 4 * Cp).astype(jnp.bfloat16)

    # ---- weight packing (tiny, once per call).
    # Down: D[i,j] = sum_{dh,dw,ph,pw,c} Wd[o,c,2dh+ph,2dw+pw] * P[ph,pw][i+dh, j+dw, c]
    wd_m = jnp.zeros((4, 4, Cp, Ip), jnp.float32)
    for dh in range(2):
        for dw in range(2):
            for ph in range(2):
                for pw in range(2):
                    tap = jnp.transpose(Wd[:, :, 2 * dh + ph, 2 * dw + pw], (1, 0))
                    wd_m = wd_m.at[dh * 2 + dw, ph * 2 + pw, :C, :inner].set(tap)
    wd_m = wd_m.reshape(16 * Cp, Ip).astype(jnp.bfloat16)

    # Up (sub-pixel): out[2i+ph,2j+pw] = sum_{a,b} Rpad[i+ph+a, j+pw+b] . Wu[:,:,3-ph-2a,3-pw-2b]
    wu_m = jnp.zeros((4, 2, 2, Ip, Op), jnp.float32)
    for ph in range(2):
        for pw in range(2):
            for a in range(2):
                for b in range(2):
                    tap = Wu[:, :, 3 - ph - 2 * a, 3 - pw - 2 * b]
                    wu_m = wu_m.at[ph * 2 + pw, a, b, :inner, :outer].set(tap)
    wu_m = wu_m.reshape(4, 4 * Ip, Op).astype(jnp.bfloat16)

    bd_p = jnp.zeros((1, Ip), jnp.float32).at[0, :inner].set(bd)
    bu_p = jnp.zeros((1, Op), jnp.float32).at[0, :outer].set(bu)

    # ---- kernel 1: fused down + up + BN partial sums (grid over batch, arbitrary).
    z, stats = pl.pallas_call(
        _fused_down_up_kernel,
        grid_spec=pltpu.PrefetchScalarGridSpec(
            num_scalar_prefetch=0,
            grid=(N,),
            in_specs=[
                pl.BlockSpec((1, Ho + 1, Wo + 1, 4 * Cp), lambda n: (n, 0, 0, 0)),
                pl.BlockSpec((16 * Cp, Ip), lambda n: (0, 0)),
                pl.BlockSpec((1, Ip), lambda n: (0, 0)),
                pl.BlockSpec((4, 4 * Ip, Op), lambda n: (0, 0, 0)),
                pl.BlockSpec((1, Op), lambda n: (0, 0)),
            ],
            out_specs=[
                pl.BlockSpec((1, 4, M, Op), lambda n: (n, 0, 0, 0)),
                pl.BlockSpec((2, Op), lambda n: (0, 0)),      # resident accumulator
            ],
            scratch_shapes=[pltpu.VMEM((Ho + 2, Wo + 2, Ip), jnp.float32)],
        ),
        out_shape=[
            jax.ShapeDtypeStruct((N, 4, M, Op), jnp.float32),
            jax.ShapeDtypeStruct((2, Op), jnp.float32),
        ],
        compiler_params=pltpu.CompilerParams(
            dimension_semantics=("arbitrary",),          # BN accumulator across batch
            vmem_limit_bytes=32 * 1024 * 1024),
    )(xph, wd_m, bd_p, wu_m, bu_p)

    # ---- BN batch statistics -> per-channel affine (tiny, plain JAX).
    count = float(N * 4 * M)                              # = N * H * W output pixels
    mean = stats[0] / count
    var = jnp.maximum(stats[1] / count - mean * mean, 0.0)   # biased (train-mode) variance
    inv = jax.lax.rsqrt(var + 1e-5)
    gamma_p = jnp.zeros((Op,), jnp.float32).at[:outer].set(gamma)
    beta_p = jnp.zeros((Op,), jnp.float32).at[:outer].set(beta)
    scale = (gamma_p * inv).reshape(1, Op)
    shift = (beta_p - mean * gamma_p * inv).reshape(1, Op)

    # ---- kernel 2: lane-dense normalize pass (parallel grid over batch).
    y = pl.pallas_call(
        _bn_affine_kernel,
        grid_spec=pltpu.PrefetchScalarGridSpec(
            num_scalar_prefetch=0,
            grid=(N,),
            in_specs=[
                pl.BlockSpec((1, 4, M, Op), lambda n: (n, 0, 0, 0)),
                pl.BlockSpec((1, Op), lambda n: (0, 0)),
                pl.BlockSpec((1, Op), lambda n: (0, 0)),
            ],
            out_specs=pl.BlockSpec((1, 4, M, Op), lambda n: (n, 0, 0, 0)),
        ),
        out_shape=jax.ShapeDtypeStruct((N, 4, M, Op), jnp.float32),
        compiler_params=pltpu.CompilerParams(
            dimension_semantics=("parallel",),
            vmem_limit_bytes=32 * 1024 * 1024),
    )(z, scale, shift)

    # ---- un-pad channels, interleave sub-pixel phases back to NCHW, skip connection.
    y = y[..., :outer].reshape(N, 2, 2, Ho, Wo, outer)        # (n, ph, pw, i, j, co)
    y = jnp.transpose(y, (0, 5, 3, 1, 4, 2)).reshape(N, outer, H, W)
    return jnp.concatenate([x.astype(jnp.float32), y], axis=1)


# ------------------------- independent numpy reference ---------------------

def _ref_forward(x, Wd, bd, Wu, bu, gamma, beta, eps=1e-5):
    N, C, H, W = x.shape
    inner, outer = Wd.shape[0], Wu.shape[1]
    Ho, Wo = H // 2, W // 2
    h = np.where(x >= 0, x, 0.2 * x)
    hp = np.pad(h, ((0, 0), (0, 0), (1, 1), (1, 1)))
    d = np.zeros((N, inner, Ho, Wo), np.float32)
    for kh in range(4):
        for kw in range(4):
            sl = hp[:, :, kh:kh + 2 * Ho:2, kw:kw + 2 * Wo:2]
            d += np.einsum('nchw,oc->nohw', sl, Wd[:, :, kh, kw])
    d += bd[None, :, None, None]
    r = np.maximum(d, 0.0)
    canvas = np.zeros((N, outer, 2 * Ho + 2, 2 * Wo + 2), np.float32)
    for kh in range(4):
        for kw in range(4):
            canvas[:, :, kh:kh + 2 * Ho:2, kw:kw + 2 * Wo:2] += \
                np.einsum('nchw,co->nohw', r, Wu[:, :, kh, kw])
    up = canvas[:, :, 1:1 + 2 * Ho, 1:1 + 2 * Wo] + bu[None, :, None, None]
    mean = up.mean(axis=(0, 2, 3), keepdims=True)
    var = up.var(axis=(0, 2, 3), keepdims=True)
    y = gamma[None, :, None, None] * (up - mean) / np.sqrt(var + eps) + \
        beta[None, :, None, None]
    return np.concatenate([x, y], axis=1)


# ----------------------------------- main -----------------------------------

if __name__ == "__main__":
    N, outer_nc, inner_nc, H, W = 2, 4, 8, 16, 16
    ks = jax.random.split(jax.random.PRNGKey(0), 7)
    x = jax.random.normal(ks[0], (N, outer_nc, H, W), jnp.float32)
    # Deterministic synthetic parameters (shapes from the module's __init__).
    Wd = 0.1 * jax.random.normal(ks[1], (inner_nc, outer_nc, 4, 4), jnp.float32)
    bd = 0.1 * jax.random.normal(ks[2], (inner_nc,), jnp.float32)
    Wu = 0.1 * jax.random.normal(ks[3], (inner_nc, outer_nc, 4, 4), jnp.float32)
    bu = 0.1 * jax.random.normal(ks[4], (outer_nc,), jnp.float32)
    gamma = 1.0 + 0.1 * jax.random.normal(ks[5], (outer_nc,), jnp.float32)
    beta = 0.1 * jax.random.normal(ks[6], (outer_nc,), jnp.float32)

    fwd = jax.jit(unet_skip_innermost)
    out = jax.block_until_ready(fwd(x, (Wd, bd, Wu, bu, gamma, beta)))

    ref = _ref_forward(np.asarray(x), np.asarray(Wd), np.asarray(bd),
                       np.asarray(Wu), np.asarray(bu),
                       np.asarray(gamma), np.asarray(beta))
    # bf16 MXU inputs with f32 accumulation -> slightly relaxed tolerance.
    np.testing.assert_allclose(np.asarray(out), ref, rtol=2e-2, atol=2e-2)
    assert out.shape == (N, 2 * outer_nc, H, W)
    print("KERNEL_OK")
</pallas_src>

<mosaic_0001>
module attributes {stable_mosaic.version = 11 : i64} {
  func.func @_fused_down_up_kernel(%arg0: i32, %arg1: memref<1x9x9x128xbf16, #tpu.memory_space<vmem>>, %arg2: memref<512x128xbf16, #tpu.memory_space<vmem>>, %arg3: memref<1x128xf32, #tpu.memory_space<vmem>>, %arg4: memref<4x512x128xbf16, #tpu.memory_space<vmem>>, %arg5: memref<1x128xf32, #tpu.memory_space<vmem>>, %arg6: memref<1x4x64x128xf32, #tpu.memory_space<vmem>>, %arg7: memref<2x128xf32, #tpu.memory_space<vmem>>, %arg8: memref<10x10x128xf32, #tpu.memory_space<vmem>>) attributes {dimension_semantics = [#tpu.dimension_semantics<arbitrary>], iteration_bounds = array<i64: 2>, scalar_prefetch = 0 : i64, scratch_operands = 1 : i64, tpu.core_type = #tpu.core_type<tc>, window_params = [{transform_indices = @transform_0, window_bounds = array<i64: 1, 9, 9, 128>}, {pipeline_mode = #tpu.pipeline_mode<synchronous>, transform_indices = @transform_1, window_bounds = array<i64: 512, 128>}, {pipeline_mode = #tpu.pipeline_mode<synchronous>, transform_indices = @transform_2, window_bounds = array<i64: 1, 128>}, {pipeline_mode = #tpu.pipeline_mode<synchronous>, transform_indices = @transform_3, window_bounds = array<i64: 4, 512, 128>}, {pipeline_mode = #tpu.pipeline_mode<synchronous>, transform_indices = @transform_4, window_bounds = array<i64: 1, 128>}, {transform_indices = @transform_5, window_bounds = array<i64: 1, 4, 64, 128>}, {pipeline_mode = #tpu.pipeline_mode<synchronous>, transform_indices = @transform_6, window_bounds = array<i64: 2, 128>}]} {
    %c0_i32 = arith.constant 0 : i32
    %0 = arith.cmpi eq, %arg0, %c0_i32 : i32
    %1 = arith.extui %0 : i1 to i32
    %c0_i32_0 = arith.constant 0 : i32
    %2 = arith.cmpi ne, %1, %c0_i32_0 : i32
    scf.if %2 {
      %cst_68 = arith.constant 0.000000e+00 : f32
      %126 = vector.broadcast %cst_68 : f32 to vector<2x128xf32>
      %c0_69 = arith.constant 0 : index
      %c0_70 = arith.constant 0 : index
      %127 = vector.load %arg7[%c0_69, %c0_70] : memref<2x128xf32, #tpu.memory_space<vmem>>, vector<2x128xf32>
      tpu.vector_store %arg7[%c0_69, %c0_70], %126 {strides = array<i32>} : memref<2x128xf32, #tpu.memory_space<vmem>>, vector<2x128xf32>,
      %cst_71 = arith.constant 0.000000e+00 : f32
      %128 = vector.broadcast %cst_71 : f32 to vector<10x10x128xf32>
      %c0_72 = arith.constant 0 : index
      %c0_73 = arith.constant 0 : index
      %c0_74 = arith.constant 0 : index
      %129 = vector.load %arg8[%c0_72, %c0_73, %c0_74] : memref<10x10x128xf32, #tpu.memory_space<vmem>>, vector<10x10x128xf32>
      tpu.vector_store %arg8[%c0_72, %c0_73, %c0_74], %128 {strides = array<i32>} : memref<10x10x128xf32, #tpu.memory_space<vmem>>, vector<10x10x128xf32>,
    } else {
    }
    %c0 = arith.constant 0 : index
    %c0_1 = arith.constant 0 : index
    %c0_2 = arith.constant 0 : index
    %c0_3 = arith.constant 0 : index
    %3 = vector.load %arg1[%c0, %c0_1, %c0_2, %c0_3] : memref<1x9x9x128xbf16, #tpu.memory_space<vmem>>, vector<1x9x9x128xbf16>
    %4 = vector.shape_cast %3 : vector<1x9x9x128xbf16> to vector<9x9x128xbf16>
    %5 = arith.extf %4 : vector<9x9x128xbf16> to vector<9x9x128xf32>
    %cst = arith.constant 0.000000e+00 : f32
    %6 = vector.broadcast %cst : f32 to vector<9x9x128xf32>
    %7 = arith.cmpf oge, %5, %6 : vector<9x9x128xf32>
    %cst_4 = arith.constant 2.000000e-01 : f32
    %8 = vector.broadcast %cst_4 : f32 to vector<9x9x128xf32>
    %9 = arith.mulf %8, %5 : vector<9x9x128xf32>
    %10 = arith.select %7, %5, %9 : vector<9x9x128xi1>, vector<9x9x128xf32>
    %11 = vector.extract_strided_slice %10 {offsets = [0, 0, 0], sizes = [8, 8, 128], strides = [1, 1, 1]} : vector<9x9x128xf32> to vector<8x8x128xf32>
    %12 = vector.extract_strided_slice %10 {offsets = [0, 1, 0], sizes = [8, 8, 128], strides = [1, 1, 1]} : vector<9x9x128xf32> to vector<8x8x128xf32>
    %13 = vector.extract_strided_slice %10 {offsets = [1, 0, 0], sizes = [8, 8, 128], strides = [1, 1, 1]} : vector<9x9x128xf32> to vector<8x8x128xf32>
    %14 = vector.extract_strided_slice %10 {offsets = [1, 1, 0], sizes = [8, 8, 128], strides = [1, 1, 1]} : vector<9x9x128xf32> to vector<8x8x128xf32>
    %15 = tpu.concatenate %11, %12, %13, %14 in 2 : vector<8x8x128xf32>, vector<8x8x128xf32>, vector<8x8x128xf32>, vector<8x8x128xf32> -> vector<8x8x512xf32>
    %16 = vector.shape_cast %15 : vector<8x8x512xf32> to vector<64x512xf32>
    %17 = arith.truncf %16 : vector<64x512xf32> to vector<64x512xbf16>
    %c0_5 = arith.constant 0 : index
    %c0_6 = arith.constant 0 : index
    %18 = vector.load %arg2[%c0_5, %c0_6] : memref<512x128xbf16, #tpu.memory_space<vmem>>, vector<512x128xbf16>
    %cst_7 = arith.constant dense<0.000000e+00> : vector<64x128xf32>
    %19 = tpu.matmul %17, %18, %cst_7 {dimension_numbers = #tpu.dot_dimension_numbers<[1], [0], [0], [1], [0, 0, 1, 1], [], []>} : vector<64x512xbf16>, vector<512x128xbf16>, vector<64x128xf32> -> vector<64x128xf32>
    %c0_8 = arith.constant 0 : index
    %c0_9 = arith.constant 0 : index
    %20 = vector.load %arg3[%c0_8, %c0_9] : memref<1x128xf32, #tpu.memory_space<vmem>>, vector<1x128xf32>
    %21 = vector.broadcast %20 : vector<1x128xf32> to vector<64x128xf32>
    %22 = arith.addf %19, %21 : vector<64x128xf32>
    %cst_10 = arith.constant 0.000000e+00 : f32
    %23 = vector.broadcast %cst_10 : f32 to vector<64x128xf32>
    %24 = arith.maximumf %22, %23 : vector<64x128xf32>
    %25 = vector.shape_cast %24 : vector<64x128xf32> to vector<8x8x128xf32>
    %c1 = arith.constant 1 : index
    %c1_11 = arith.constant 1 : index
    %c0_12 = arith.constant 0 : index
    %26 = vector.load %arg8[%c1, %c1_11, %c0_12] : memref<10x10x128xf32, #tpu.memory_space<vmem>>, vector<8x8x128xf32>
    tpu.vector_store %arg8[%c1, %c1_11, %c0_12], %25 {strides = array<i32>} : memref<10x10x128xf32, #tpu.memory_space<vmem>>, vector<8x8x128xf32>,
    %c0_13 = arith.constant 0 : index
    %c0_14 = arith.constant 0 : index
    %c0_15 = arith.constant 0 : index
    %27 = vector.load %arg8[%c0_13, %c0_14, %c0_15] : memref<10x10x128xf32, #tpu.memory_space<vmem>>, vector<10x10x128xf32>
    %cst_16 = arith.constant 0.000000e+00 : f32
    %28 = vector.broadcast %cst_16 : f32 to vector<1x128xf32>
    %cst_17 = arith.constant 0.000000e+00 : f32
    %29 = vector.broadcast %cst_17 : f32 to vector<1x128xf32>
    %30 = vector.extract_strided_slice %27 {offsets = [0, 0, 0], sizes = [8, 8, 128], strides = [1, 1, 1]} : vector<10x10x128xf32> to vector<8x8x128xf32>
    %31 = vector.extract_strided_slice %27 {offsets = [0, 1, 0], sizes = [8, 8, 128], strides = [1, 1, 1]} : vector<10x10x128xf32> to vector<8x8x128xf32>
    %32 = vector.extract_strided_slice %27 {offsets = [1, 0, 0], sizes = [8, 8, 128], strides = [1, 1, 1]} : vector<10x10x128xf32> to vector<8x8x128xf32>
    %33 = vector.extract_strided_slice %27 {offsets = [1, 1, 0], sizes = [8, 8, 128], strides = [1, 1, 1]} : vector<10x10x128xf32> to vector<8x8x128xf32>
    %34 = tpu.concatenate %30, %31, %32, %33 in 2 : vector<8x8x128xf32>, vector<8x8x128xf32>, vector<8x8x128xf32>, vector<8x8x128xf32> -> vector<8x8x512xf32>
    %35 = vector.shape_cast %34 : vector<8x8x512xf32> to vector<64x512xf32>
    %36 = arith.truncf %35 : vector<64x512xf32> to vector<64x512xbf16>
    %c0_18 = arith.constant 0 : index
    %c0_19 = arith.constant 0 : index
    %c0_20 = arith.constant 0 : index
    %37 = vector.load %arg4[%c0_18, %c0_19, %c0_20] : memref<4x512x128xbf16, #tpu.memory_space<vmem>>, vector<1x512x128xbf16>
    %38 = vector.shape_cast %37 : vector<1x512x128xbf16> to vector<512x128xbf16>
    %cst_21 = arith.constant dense<0.000000e+00> : vector<64x128xf32>
    %39 = tpu.matmul %36, %38, %cst_21 {dimension_numbers = #tpu.dot_dimension_numbers<[1], [0], [0], [1], [0, 0, 1, 1], [], []>} : vector<64x512xbf16>, vector<512x128xbf16>, vector<64x128xf32> -> vector<64x128xf32>
    %c0_22 = arith.constant 0 : index
    %c0_23 = arith.constant 0 : index
    %40 = vector.load %arg5[%c0_22, %c0_23] : memref<1x128xf32, #tpu.memory_space<vmem>>, vector<1x128xf32>
    %41 = vector.broadcast %40 : vector<1x128xf32> to vector<64x128xf32>
    %42 = arith.addf %39, %41 : vector<64x128xf32>
    %c0_24 = arith.constant 0 : index
    %c0_25 = arith.constant 0 : index
    %c0_26 = arith.constant 0 : index
    %c0_27 = arith.constant 0 : index
    %43 = vector.load %arg6[%c0_24, %c0_25, %c0_26, %c0_27] : memref<1x4x64x128xf32, #tpu.memory_space<vmem>>, vector<1x1x64x128xf32>
    %44 = vector.shape_cast %43 : vector<1x1x64x128xf32> to vector<64x128xf32>
    %45 = vector.shape_cast %42 : vector<64x128xf32> to vector<1x1x64x128xf32>
    tpu.vector_store %arg6[%c0_24, %c0_25, %c0_26, %c0_27], %45 {strides = array<i32>} : memref<1x4x64x128xf32, #tpu.memory_space<vmem>>, vector<1x1x64x128xf32>,
    %cst_28 = arith.constant dense<0.000000e+00> : vector<128xf32>
    %46 = vector.multi_reduction <add>, %42, %cst_28 [0] : vector<64x128xf32> to vector<128xf32>
    %47 = vector.shape_cast %46 : vector<128xf32> to vector<1x128xf32>
    %48 = arith.addf %28, %47 : vector<1x128xf32>
    %49 = arith.mulf %42, %42 : vector<64x128xf32>
    %cst_29 = arith.constant dense<0.000000e+00> : vector<128xf32>
    %50 = vector.multi_reduction <add>, %49, %cst_29 [0] : vector<64x128xf32> to vector<128xf32>
    %51 = vector.shape_cast %50 : vector<128xf32> to vector<1x128xf32>
    %52 = arith.addf %29, %51 : vector<1x128xf32>
    %53 = vector.extract_strided_slice %27 {offsets = [0, 1, 0], sizes = [8, 8, 128], strides = [1, 1, 1]} : vector<10x10x128xf32> to vector<8x8x128xf32>
    %54 = vector.extract_strided_slice %27 {offsets = [0, 2, 0], sizes = [8, 8, 128], strides = [1, 1, 1]} : vector<10x10x128xf32> to vector<8x8x128xf32>
    %55 = vector.extract_strided_slice %27 {offsets = [1, 1, 0], sizes = [8, 8, 128], strides = [1, 1, 1]} : vector<10x10x128xf32> to vector<8x8x128xf32>
    %56 = vector.extract_strided_slice %27 {offsets = [1, 2, 0], sizes = [8, 8, 128], strides = [1, 1, 1]} : vector<10x10x128xf32> to vector<8x8x128xf32>
    %57 = tpu.concatenate %53, %54, %55, %56 in 2 : vector<8x8x128xf32>, vector<8x8x128xf32>, vector<8x8x128xf32>, vector<8x8x128xf32> -> vector<8x8x512xf32>
    %58 = vector.shape_cast %57 : vector<8x8x512xf32> to vector<64x512xf32>
    %59 = arith.truncf %58 : vector<64x512xf32> to vector<64x512xbf16>
    %c1_30 = arith.constant 1 : index
    %c0_31 = arith.constant 0 : index
    %c0_32 = arith.constant 0 : index
    %60 = vector.load %arg4[%c1_30, %c0_31, %c0_32] : memref<4x512x128xbf16, #tpu.memory_space<vmem>>, vector<1x512x128xbf16>
    %61 = vector.shape_cast %60 : vector<1x512x128xbf16> to vector<512x128xbf16>
    %cst_33 = arith.constant dense<0.000000e+00> : vector<64x128xf32>
    %62 = tpu.matmul %59, %61, %cst_33 {dimension_numbers = #tpu.dot_dimension_numbers<[1], [0], [0], [1], [0, 0, 1, 1], [], []>} : vector<64x512xbf16>, vector<512x128xbf16>, vector<64x128xf32> -> vector<64x128xf32>
    %c0_34 = arith.constant 0 : index
    %c0_35 = arith.constant 0 : index
    %63 = vector.load %arg5[%c0_34, %c0_35] : memref<1x128xf32, #tpu.memory_space<vmem>>, vector<1x128xf32>
    %64 = vector.broadcast %63 : vector<1x128xf32> to vector<64x128xf32>
    %65 = arith.addf %62, %64 : vector<64x128xf32>
    %c0_36 = arith.constant 0 : index
    %c1_37 = arith.constant 1 : index
    %c0_38 = arith.constant 0 : index
    %c0_39 = arith.constant 0 : index
    %66 = vector.load %arg6[%c0_36, %c1_37, %c0_38, %c0_39] : memref<1x4x64x128xf32, #tpu.memory_space<vmem>>, vector<1x1x64x128xf32>
    %67 = vector.shape_cast %66 : vector<1x1x64x128xf32> to vector<64x128xf32>
    %68 = vector.shape_cast %65 : vector<64x128xf32> to vector<1x1x64x128xf32>
    tpu.vector_store %arg6[%c0_36, %c1_37, %c0_38, %c0_39], %68 {strides = array<i32>} : memref<1x4x64x128xf32, #tpu.memory_space<vmem>>, vector<1x1x64x128xf32>,
    %cst_40 = arith.constant dense<0.000000e+00> : vector<128xf32>
    %69 = vector.multi_reduction <add>, %65, %cst_40 [0] : vector<64x128xf32> to vector<128xf32>
    %70 = vector.shape_cast %69 : vector<128xf32> to vector<1x128xf32>
    %71 = arith.addf %48, %70 : vector<1x128xf32>
    %72 = arith.mulf %65, %65 : vector<64x128xf32>
    %cst_41 = arith.constant dense<0.000000e+00> : vector<128xf32>
    %73 = vector.multi_reduction <add>, %72, %cst_41 [0] : vector<64x128xf32> to vector<128xf32>
    %74 = vector.shape_cast %73 : vector<128xf32> to vector<1x128xf32>
    %75 = arith.addf %52, %74 : vector<1x128xf32>
    %76 = vector.extract_strided_slice %27 {offsets = [1, 0, 0], sizes = [8, 8, 128], strides = [1, 1, 1]} : vector<10x10x128xf32> to vector<8x8x128xf32>
    %77 = vector.extract_strided_slice %27 {offsets = [1, 1, 0], sizes = [8, 8, 128], strides = [1, 1, 1]} : vector<10x10x128xf32> to vector<8x8x128xf32>
    %78 = vector.extract_strided_slice %27 {offsets = [2, 0, 0], sizes = [8, 8, 128], strides = [1, 1, 1]} : vector<10x10x128xf32> to vector<8x8x128xf32>
    %79 = vector.extract_strided_slice %27 {offsets = [2, 1, 0], sizes = [8, 8, 128], strides = [1, 1, 1]} : vector<10x10x128xf32> to vector<8x8x128xf32>
    %80 = tpu.concatenate %76, %77, %78, %79 in 2 : vector<8x8x128xf32>, vector<8x8x128xf32>, vector<8x8x128xf32>, vector<8x8x128xf32> -> vector<8x8x512xf32>
    %81 = vector.shape_cast %80 : vector<8x8x512xf32> to vector<64x512xf32>
    %82 = arith.truncf %81 : vector<64x512xf32> to vector<64x512xbf16>
    %c2 = arith.constant 2 : index
    %c0_42 = arith.constant 0 : index
    %c0_43 = arith.constant 0 : index
    %83 = vector.load %arg4[%c2, %c0_42, %c0_43] : memref<4x512x128xbf16, #tpu.memory_space<vmem>>, vector<1x512x128xbf16>
    %84 = vector.shape_cast %83 : vector<1x512x128xbf16> to vector<512x128xbf16>
    %cst_44 = arith.constant dense<0.000000e+00> : vector<64x128xf32>
    %85 = tpu.matmul %82, %84, %cst_44 {dimension_numbers = #tpu.dot_dimension_numbers<[1], [0], [0], [1], [0, 0, 1, 1], [], []>} : vector<64x512xbf16>, vector<512x128xbf16>, vector<64x128xf32> -> vector<64x128xf32>
    %c0_45 = arith.constant 0 : index
    %c0_46 = arith.constant 0 : index
    %86 = vector.load %arg5[%c0_45, %c0_46] : memref<1x128xf32, #tpu.memory_space<vmem>>, vector<1x128xf32>
    %87 = vector.broadcast %86 : vector<1x128xf32> to vector<64x128xf32>
    %88 = arith.addf %85, %87 : vector<64x128xf32>
    %c0_47 = arith.constant 0 : index
    %c2_48 = arith.constant 2 : index
    %c0_49 = arith.constant 0 : index
    %c0_50 = arith.constant 0 : index
    %89 = vector.load %arg6[%c0_47, %c2_48, %c0_49, %c0_50] : memref<1x4x64x128xf32, #tpu.memory_space<vmem>>, vector<1x1x64x128xf32>
    %90 = vector.shape_cast %89 : vector<1x1x64x128xf32> to vector<64x128xf32>
    %91 = vector.shape_cast %88 : vector<64x128xf32> to vector<1x1x64x128xf32>
    tpu.vector_store %arg6[%c0_47, %c2_48, %c0_49, %c0_50], %91 {strides = array<i32>} : memref<1x4x64x128xf32, #tpu.memory_space<vmem>>, vector<1x1x64x128xf32>,
    %cst_51 = arith.constant dense<0.000000e+00> : vector<128xf32>
    %92 = vector.multi_reduction <add>, %88, %cst_51 [0] : vector<64x128xf32> to vector<128xf32>
    %93 = vector.shape_cast %92 : vector<128xf32> to vector<1x128xf32>
    %94 = arith.addf %71, %93 : vector<1x128xf32>
    %95 = arith.mulf %88, %88 : vector<64x128xf32>
    %cst_52 = arith.constant dense<0.000000e+00> : vector<128xf32>
    %96 = vector.multi_reduction <add>, %95, %cst_52 [0] : vector<64x128xf32> to vector<128xf32>
    %97 = vector.shape_cast %96 : vector<128xf32> to vector<1x128xf32>
    %98 = arith.addf %75, %97 : vector<1x128xf32>
    %99 = vector.extract_strided_slice %27 {offsets = [1, 1, 0], sizes = [8, 8, 128], strides = [1, 1, 1]} : vector<10x10x128xf32> to vector<8x8x128xf32>
    %100 = vector.extract_strided_slice %27 {offsets = [1, 2, 0], sizes = [8, 8, 128], strides = [1, 1, 1]} : vector<10x10x128xf32> to vector<8x8x128xf32>
    %101 = vector.extract_strided_slice %27 {offsets = [2, 1, 0], sizes = [8, 8, 128], strides = [1, 1, 1]} : vector<10x10x128xf32> to vector<8x8x128xf32>
    %102 = vector.extract_strided_slice %27 {offsets = [2, 2, 0], sizes = [8, 8, 128], strides = [1, 1, 1]} : vector<10x10x128xf32> to vector<8x8x128xf32>
    %103 = tpu.concatenate %99, %100, %101, %102 in 2 : vector<8x8x128xf32>, vector<8x8x128xf32>, vector<8x8x128xf32>, vector<8x8x128xf32> -> vector<8x8x512xf32>
    %104 = vector.shape_cast %103 : vector<8x8x512xf32> to vector<64x512xf32>
    %105 = arith.truncf %104 : vector<64x512xf32> to vector<64x512xbf16>
    %c3 = arith.constant 3 : index
    %c0_53 = arith.constant 0 : index
    %c0_54 = arith.constant 0 : index
    %106 = vector.load %arg4[%c3, %c0_53, %c0_54] : memref<4x512x128xbf16, #tpu.memory_space<vmem>>, vector<1x512x128xbf16>
    %107 = vector.shape_cast %106 : vector<1x512x128xbf16> to vector<512x128xbf16>
    %cst_55 = arith.constant dense<0.000000e+00> : vector<64x128xf32>
    %108 = tpu.matmul %105, %107, %cst_55 {dimension_numbers = #tpu.dot_dimension_numbers<[1], [0], [0], [1], [0, 0, 1, 1], [], []>} : vector<64x512xbf16>, vector<512x128xbf16>, vector<64x128xf32> -> vector<64x128xf32>
    %c0_56 = arith.constant 0 : index
    %c0_57 = arith.constant 0 : index
    %109 = vector.load %arg5[%c0_56, %c0_57] : memref<1x128xf32, #tpu.memory_space<vmem>>, vector<1x128xf32>
    %110 = vector.broadcast %109 : vector<1x128xf32> to vector<64x128xf32>
    %111 = arith.addf %108, %110 : vector<64x128xf32>
    %c0_58 = arith.constant 0 : index
    %c3_59 = arith.constant 3 : index
    %c0_60 = arith.constant 0 : index
    %c0_61 = arith.constant 0 : index
    %112 = vector.load %arg6[%c0_58, %c3_59, %c0_60, %c0_61] : memref<1x4x64x128xf32, #tpu.memory_space<vmem>>, vector<1x1x64x128xf32>
    %113 = vector.shape_cast %112 : vector<1x1x64x128xf32> to vector<64x128xf32>
    %114 = vector.shape_cast %111 : vector<64x128xf32> to vector<1x1x64x128xf32>
    tpu.vector_store %arg6[%c0_58, %c3_59, %c0_60, %c0_61], %114 {strides = array<i32>} : memref<1x4x64x128xf32, #tpu.memory_space<vmem>>, vector<1x1x64x128xf32>,
    %cst_62 = arith.constant dense<0.000000e+00> : vector<128xf32>
    %115 = vector.multi_reduction <add>, %111, %cst_62 [0] : vector<64x128xf32> to vector<128xf32>
    %116 = vector.shape_cast %115 : vector<128xf32> to vector<1x128xf32>
    %117 = arith.addf %94, %116 : vector<1x128xf32>
    %118 = arith.mulf %111, %111 : vector<64x128xf32>
    %cst_63 = arith.constant dense<0.000000e+00> : vector<128xf32>
    %119 = vector.multi_reduction <add>, %118, %cst_63 [0] : vector<64x128xf32> to vector<128xf32>
    %120 = vector.shape_cast %119 : vector<128xf32> to vector<1x128xf32>
    %121 = arith.addf %98, %120 : vector<1x128xf32>
    %c0_64 = arith.constant 0 : index
    %c0_65 = arith.constant 0 : index
    %122 = vector.load %arg7[%c0_64, %c0_65] : memref<2x128xf32, #tpu.memory_space<vmem>>, vector<2x128xf32>
    %123 = tpu.concatenate %117, %121 in 0 : vector<1x128xf32>, vector<1x128xf32> -> vector<2x128xf32>
    %124 = arith.addf %122, %123 : vector<2x128xf32>
    %c0_66 = arith.constant 0 : index
    %c0_67 = arith.constant 0 : index
    %125 = vector.load %arg7[%c0_66, %c0_67] : memref<2x128xf32, #tpu.memory_space<vmem>>, vector<2x128xf32>
    tpu.vector_store %arg7[%c0_66, %c0_67], %124 {strides = array<i32>} : memref<2x128xf32, #tpu.memory_space<vmem>>, vector<2x128xf32>,
    return
  }
  func.func @transform_0(%arg0: i32) -> (i32, i32, i32, i32) {
    %c0_i32 = arith.constant 0 : i32
    %c0_i32_0 = arith.constant 0 : i32
    %c0_i32_1 = arith.constant 0 : i32
    %c0_i32_2 = arith.constant 0 : i32
    return %arg0, %c0_i32, %c0_i32_0, %c0_i32_1 : i32, i32, i32, i32
  }
  func.func @transform_1(%arg0: i32) -> (i32, i32) {
    %c0_i32 = arith.constant 0 : i32
    %c0_i32_0 = arith.constant 0 : i32
    %c0_i32_1 = arith.constant 0 : i32
    return %c0_i32, %c0_i32_0 : i32, i32
  }
  func.func @transform_2(%arg0: i32) -> (i32, i32) {
    %c0_i32 = arith.constant 0 : i32
    %c0_i32_0 = arith.constant 0 : i32
    %c0_i32_1 = arith.constant 0 : i32
    return %c0_i32, %c0_i32_0 : i32, i32
  }
  func.func @transform_3(%arg0: i32) -> (i32, i32, i32) {
    %c0_i32 = arith.constant 0 : i32
    %c0_i32_0 = arith.constant 0 : i32
    %c0_i32_1 = arith.constant 0 : i32
    %c0_i32_2 = arith.constant 0 : i32
    return %c0_i32, %c0_i32_0, %c0_i32_1 : i32, i32, i32
  }
  func.func @transform_4(%arg0: i32) -> (i32, i32) {
    %c0_i32 = arith.constant 0 : i32
    %c0_i32_0 = arith.constant 0 : i32
    %c0_i32_1 = arith.constant 0 : i32
    return %c0_i32, %c0_i32_0 : i32, i32
  }
  func.func @transform_5(%arg0: i32) -> (i32, i32, i32, i32) {
    %c0_i32 = arith.constant 0 : i32
    %c0_i32_0 = arith.constant 0 : i32
    %c0_i32_1 = arith.constant 0 : i32
    %c0_i32_2 = arith.constant 0 : i32
    return %arg0, %c0_i32, %c0_i32_0, %c0_i32_1 : i32, i32, i32, i32
  }
  func.func @transform_6(%arg0: i32) -> (i32, i32) {
    %c0_i32 = arith.constant 0 : i32
    %c0_i32_0 = arith.constant 0 : i32
    %c0_i32_1 = arith.constant 0 : i32
    return %c0_i32, %c0_i32_0 : i32, i32
  }
}

module attributes {stable_mosaic.version = 11 : i64} {
  func.func @_bn_affine_kernel(%arg0: i32, %arg1: memref<1x4x64x128xf32, #tpu.memory_space<vmem>>, %arg2: memref<1x128xf32, #tpu.memory_space<vmem>>, %arg3: memref<1x128xf32, #tpu.memory_space<vmem>>, %arg4: memref<1x4x64x128xf32, #tpu.memory_space<vmem>>) attributes {dimension_semantics = [#tpu.dimension_semantics<parallel>], iteration_bounds = array<i64: 2>, scalar_prefetch = 0 : i64, scratch_operands = 0 : i64, tpu.core_type = #tpu.core_type<tc>, window_params = [{transform_indices = @transform_0, window_bounds = array<i64: 1, 4, 64, 128>}, {pipeline_mode = #tpu.pipeline_mode<synchronous>, transform_indices = @transform_1, window_bounds = array<i64: 1, 128>}, {pipeline_mode = #tpu.pipeline_mode<synchronous>, transform_indices = @transform_2, window_bounds = array<i64: 1, 128>}, {transform_indices = @transform_3, window_bounds = array<i64: 1, 4, 64, 128>}]} {
    %c0 = arith.constant 0 : index
    %c0_0 = arith.constant 0 : index
    %c0_1 = arith.constant 0 : index
    %c0_2 = arith.constant 0 : index
    %0 = vector.load %arg1[%c0, %c0_0, %c0_1, %c0_2] : memref<1x4x64x128xf32, #tpu.memory_space<vmem>>, vector<1x4x64x128xf32>
    %c0_3 = arith.constant 0 : index
    %c0_4 = arith.constant 0 : index
    %1 = vector.load %arg2[%c0_3, %c0_4] : memref<1x128xf32, #tpu.memory_space<vmem>>, vector<1x128xf32>
    %2 = vector.shape_cast %1 : vector<1x128xf32> to vector<1x1x1x128xf32>
    %3 = vector.broadcast %2 : vector<1x1x1x128xf32> to vector<1x4x64x128xf32>
    %4 = arith.mulf %0, %3 : vector<1x4x64x128xf32>
    %c0_5 = arith.constant 0 : index
    %c0_6 = arith.constant 0 : index
    %5 = vector.load %arg3[%c0_5, %c0_6] : memref<1x128xf32, #tpu.memory_space<vmem>>, vector<1x128xf32>
    %6 = vector.shape_cast %5 : vector<1x128xf32> to vector<1x1x1x128xf32>
    %7 = vector.broadcast %6 : vector<1x1x1x128xf32> to vector<1x4x64x128xf32>
    %8 = arith.addf %4, %7 : vector<1x4x64x128xf32>
    %c0_7 = arith.constant 0 : index
    %c0_8 = arith.constant 0 : index
    %c0_9 = arith.constant 0 : index
    %c0_10 = arith.constant 0 : index
    %9 = vector.load %arg4[%c0_7, %c0_8, %c0_9, %c0_10] : memref<1x4x64x128xf32, #tpu.memory_space<vmem>>, vector<1x4x64x128xf32>
    tpu.vector_store %arg4[%c0_7, %c0_8, %c0_9, %c0_10], %8 {strides = array<i32>} : memref<1x4x64x128xf32, #tpu.memory_space<vmem>>, vector<1x4x64x128xf32>,
    return
  }
  func.func @transform_0(%arg0: i32) -> (i32, i32, i32, i32) {
    %c0_i32 = arith.constant 0 : i32
    %c0_i32_0 = arith.constant 0 : i32
    %c0_i32_1 = arith.constant 0 : i32
    %c0_i32_2 = arith.constant 0 : i32
    return %arg0, %c0_i32, %c0_i32_0, %c0_i32_1 : i32, i32, i32, i32
  }
  func.func @transform_1(%arg0: i32) -> (i32, i32) {
    %c0_i32 = arith.constant 0 : i32
    %c0_i32_0 = arith.constant 0 : i32
    %c0_i32_1 = arith.constant 0 : i32
    return %c0_i32, %c0_i32_0 : i32, i32
  }
  func.func @transform_2(%arg0: i32) -> (i32, i32) {
    %c0_i32 = arith.constant 0 : i32
    %c0_i32_0 = arith.constant 0 : i32
    %c0_i32_1 = arith.constant 0 : i32
    return %c0_i32, %c0_i32_0 : i32, i32
  }
  func.func @transform_3(%arg0: i32) -> (i32, i32, i32, i32) {
    %c0_i32 = arith.constant 0 : i32
    %c0_i32_0 = arith.constant 0 : i32
    %c0_i32_1 = arith.constant 0 : i32
    %c0_i32_2 = arith.constant 0 : i32
    return %arg0, %c0_i32, %c0_i32_0, %c0_i32_1 : i32, i32, i32, i32
  }
}

</mosaic_0001>

<bundles_post_ra>
// kernel: unet_skip_innermost.3
= control target key start
LH: loop header
LB: loop body
LE: loop exit
PB: predicated region body
PF: predicated region fallthrough
CT: control target
= control target key end

     0   :  { %s419_s12 = smov 0   ;;  %s578_s0 = inlined_call_operand.vmem [shape: f32[2,4,64,128], index: 0, kind: input, shape index: {}]   ;;  %s579_s1 = inlined_call_operand.vmem [shape: f32[1,128], index: 1, kind: input, shape index: {}]   ;;  %s580_s2 = inlined_call_operand.vmem [shape: f32[1,128], index: 2, kind: input, shape index: {}]   ;;  %s581_s3 = inlined_call_operand.vmem [shape: f32[2,4,64,128], index: 3, kind: output, shape index: {}]  }
   0x1 LB: > { %s368_s13 = sadd.s32 4294967295, %s397_s12   ;;  %p372_p0 = scmp.ge.s32.totalorder %s397_s12, 1  ;;  %s397_s12 = sphi %s419_s12, %s13_s12  }
   0x2   : > { %p137_p1 = scmp.lt.s32.totalorder %s397_s12, 3 }
   0x4   : > { %p138_p2 = pnand %p372_p0, %p137_p1 }
   0x5   : > { %p161_p3 = scmp.lt.s32.totalorder (!%p138_p2), %s368_s13, 1  ;;  %v430_v0 = vld [vmem:[%s579_s1] ss:$0 sm:$0xff] (!%p138_p2) }
   0x6   : > { %141 = sbr.rel (%p138_p2) target bundleno = 40 (0x28), region = 32  ;;  %v440_v1 = vld [vmem:[%s580_s2] ss:$0 sm:$0xff] (!%p138_p2) }
   0xd   : > { %s583_s13 = smov (!%p161_p3, %s368_s13), 1 }
   0xe   : > { %s381_s14 = sshll.u32 %s583_s13, 8 }
   0xf   : > { %s435_s19 = scalar_lea.vmem %s578_s0, %s381_s14  ;;  %s454_s24 = scalar_lea.vmem %s581_s3, %s381_s14 }
  0x10   : > { %v171_v2 = vld [vmem:[%s435_s19] sm:$0xff]  ;;  %v172_v3 = vld [vmem:[%s435_s19 + $0x8] sm:$0xff]  ;;  %v173_v4 = vld [vmem:[%s435_s19 + $0x10] sm:$0xff] }
  0x11   : > { %v210_v5 = vmul.f32 %v430_v0, %v171_v2  ;;  %v211_v6 = vmul.f32 %v430_v0, %v172_v3  ;;  %v212_v7 = vmul.f32 %v430_v0, %v173_v4  ;;  %v174_v8 = vld [vmem:[%s435_s19 + $0x18] sm:$0xff]  ;;  %v175_v9 = vld [vmem:[%s435_s19 + $0x20] sm:$0xff]  ;;  %v176_v10 = vld [vmem:[%s435_s19 + $0x28] sm:$0xff] }
  0x12   : > { %v213_v11 = vmul.f32 %v430_v0, %v174_v8  ;;  %v214_v12 = vmul.f32 %v430_v0, %v175_v9  ;;  %v215_v13 = vmul.f32 %v430_v0, %v176_v10  ;;  %v177_v14 = vld [vmem:[%s435_s19 + $0x30] sm:$0xff]  ;;  %v178_v15 = vld [vmem:[%s435_s19 + $0x38] sm:$0xff]  ;;  %v179_v16 = vld [vmem:[%s435_s19 + $0x40] sm:$0xff] }
  0x13   : > { %v249_v17 = vadd.f32 %v440_v1, %v210_v5  ;;  %v250_v18 = vadd.f32 %v440_v1, %v211_v6  ;;  %v251_v19 = vadd.f32 %v440_v1, %v212_v7  ;;  %v216_v20 = vmul.f32 %v430_v0, %v177_v14  ;;  %v180_v21 = vld [vmem:[%s435_s19 + $0x48] sm:$0xff]  ;;  %v181_v22 = vld [vmem:[%s435_s19 + $0x50] sm:$0xff]  ;;  %v182_v23 = vld [vmem:[%s435_s19 + $0x58] sm:$0xff] }
  0x14   : > { %v252_v24 = vadd.f32 %v440_v1, %v213_v11  ;;  %v253_v25 = vadd.f32 %v440_v1, %v214_v12  ;;  %v254_v26 = vadd.f32 %v440_v1, %v215_v13  ;;  %v217_v27 = vmul.f32 %v430_v0, %v178_v15  ;;  %v183_v28 = vld [vmem:[%s435_s19 + $0x60] sm:$0xff]  ;;  %v184_v29 = vld [vmem:[%s435_s19 + $0x68] sm:$0xff]  ;;  %v185_v30 = vld [vmem:[%s435_s19 + $0x70] sm:$0xff] }
  0x15   : > { %281 = vst [vmem:[%s454_s24] sm:$0xff] %v249_v17  ;;  %282 = vst [vmem:[%s454_s24 + $0x8] sm:$0xff] %v250_v18  ;;  %v255_v31 = vadd.f32 %v440_v1, %v216_v20  ;;  %v218_v32 = vmul.f32 %v430_v0, %v179_v16  ;;  %v219_v33 = vmul.f32 %v430_v0, %v180_v21  ;;  %v186_v35 = vld [vmem:[%s435_s19 + $0x78] sm:$0xff]  ;;  %v187_v40 = vld [vmem:[%s435_s19 + $0x80] sm:$0xff] }
  0x16   : > { %283 = vst [vmem:[%s454_s24 + $0x10] sm:$0xff] %v251_v19  ;;  %v220_v34 = vmul.f32 %v430_v0, %v181_v22  ;;  %284 = vst [vmem:[%s454_s24 + $0x18] sm:$0xff] %v252_v24  ;;  %v256_v36 = vadd.f32 %v440_v1, %v217_v27  ;;  %v221_v37 = vmul.f32 %v430_v0, %v182_v23  ;;  %v188_v41 = vld [vmem:[%s435_s19 + $0x88] sm:$0xff]  ;;  %v189_v42 = vld [vmem:[%s435_s19 + $0x90] sm:$0xff] }
  0x17   : > { %285 = vst [vmem:[%s454_s24 + $0x20] sm:$0xff] %v253_v25  ;;  %286 = vst [vmem:[%s454_s24 + $0x28] sm:$0xff] %v254_v26  ;;  %v222_v38 = vmul.f32 %v430_v0, %v183_v28  ;;  %v223_v39 = vmul.f32 %v430_v0, %v184_v29  ;;  %v257_v43 = vadd.f32 %v440_v1, %v218_v32  ;;  %v190_v47 = vld [vmem:[%s435_s19 + $0x98] sm:$0xff]  ;;  %v191_v48 = vld [vmem:[%s435_s19 + $0xa0] sm:$0xff] }
  0x18   : > { %287 = vst [vmem:[%s454_s24 + $0x30] sm:$0xff] %v255_v31  ;;  %v258_v44 = vadd.f32 %v440_v1, %v219_v33  ;;  %v259_v45 = vadd.f32 %v440_v1, %v220_v34  ;;  %v224_v46 = vmul.f32 %v430_v0, %v185_v30  ;;  %v192_v49 = vld [vmem:[%s435_s19 + $0xa8] sm:$0xff]  ;;  %288 = vst [vmem:[%s454_s24 + $0x38] sm:$0xff] %v256_v36  ;;  %v193_v54 = vld [vmem:[%s435_s19 + $0xb0] sm:$0xff] }
  0x19   : > { %v260_v50 = vadd.f32 %v440_v1, %v221_v37  ;;  %v261_v51 = vadd.f32 %v440_v1, %v222_v38  ;;  %v262_v52 = vadd.f32 %v440_v1, %v223_v39  ;;  %v225_v53 = vmul.f32 %v430_v0, %v186_v35  ;;  %289 = vst [vmem:[%s454_s24 + $0x40] sm:$0xff] %v257_v43  ;;  %v194_v59 = vld [vmem:[%s435_s19 + $0xb8] sm:$0xff]  ;;  %v195_v2 = vld [vmem:[%s435_s19 + $0xc0] sm:$0xff]  ;;  %v196_v3 = vld [vmem:[%s435_s19 + $0xc8] sm:$0xff] }
  0x1a   : > { %290 = vst [vmem:[%s454_s24 + $0x48] sm:$0xff] %v258_v44  ;;  %291 = vst [vmem:[%s454_s24 + $0x50] sm:$0xff] %v259_v45  ;;  %v263_v55 = vadd.f32 %v440_v1, %v224_v46  ;;  %v226_v56 = vmul.f32 %v430_v0, %v187_v40  ;;  %v227_v57 = vmul.f32 %v430_v0, %v188_v41  ;;  %v197_v4 = vld [vmem:[%s435_s19 + $0xd0] sm:$0xff]  ;;  %v198_v9 = vld [vmem:[%s435_s19 + $0xd8] sm:$0xff] }
  0x1b   : > { %v228_v58 = vmul.f32 %v430_v0, %v189_v42  ;;  %292 = vst [vmem:[%s454_s24 + $0x58] sm:$0xff] %v260_v50  ;;  %293 = vst [vmem:[%s454_s24 + $0x60] sm:$0xff] %v261_v51  ;;  %v264_v60 = vadd.f32 %v440_v1, %v225_v53  ;;  %v229_v61 = vmul.f32 %v430_v0, %v190_v47  ;;  %v199_v10 = vld [vmem:[%s435_s19 + $0xe0] sm:$0xff]  ;;  %v200_v11 = vld [vmem:[%s435_s19 + $0xe8] sm:$0xff] }
  0x1c   : > { %294 = vst [vmem:[%s454_s24 + $0x68] sm:$0xff] %v262_v52  ;;  %v230_v62 = vmul.f32 %v430_v0, %v191_v48  ;;  %v231_v63 = vmul.f32 %v430_v0, %v192_v49  ;;  %295 = vst [vmem:[%s454_s24 + $0x70] sm:$0xff] %v263_v55  ;;  %v265_v5 = vadd.f32 %v440_v1, %v226_v56  ;;  %v201_v16 = vld [vmem:[%s435_s19 + $0xf0] sm:$0xff]  ;;  %v202_v21 = vld [vmem:[%s435_s19 + $0xf8] sm:$0xff] }
  0x1d   : > { %v266_v6 = vadd.f32 %v440_v1, %v227_v57  ;;  %v267_v7 = vadd.f32 %v440_v1, %v228_v58  ;;  %v232_v8 = vmul.f32 %v430_v0, %v193_v54  ;;  %296 = vst [vmem:[%s454_s24 + $0x78] sm:$0xff] %v264_v60  ;;  %v268_v12 = vadd.f32 %v440_v1, %v229_v61 }
  0x1e   : > { %v269_v13 = vadd.f32 %v440_v1, %v230_v62  ;;  %v270_v14 = vadd.f32 %v440_v1, %v231_v63  ;;  %v233_v15 = vmul.f32 %v430_v0, %v194_v59  ;;  %297 = vst [vmem:[%s454_s24 + $0x80] sm:$0xff] %v265_v5  ;;  %v234_v18 = vmul.f32 %v430_v0, %v195_v2 }
  0x1f   : > { %298 = vst [vmem:[%s454_s24 + $0x88] sm:$0xff] %v266_v6  ;;  %299 = vst [vmem:[%s454_s24 + $0x90] sm:$0xff] %v267_v7  ;;  %v271_v17 = vadd.f32 %v440_v1, %v232_v8  ;;  %v235_v19 = vmul.f32 %v430_v0, %v196_v3  ;;  %v236_v20 = vmul.f32 %v430_v0, %v197_v4 }
  0x20   : > { %300 = vst [vmem:[%s454_s24 + $0x98] sm:$0xff] %v268_v12  ;;  %301 = vst [vmem:[%s454_s24 + $0xa0] sm:$0xff] %v269_v13  ;;  %v272_v22 = vadd.f32 %v440_v1, %v233_v15  ;;  %v237_v23 = vmul.f32 %v430_v0, %v198_v9  ;;  %v238_v24 = vmul.f32 %v430_v0, %v199_v10 }
  0x21   : > { %302 = vst [vmem:[%s454_s24 + $0xa8] sm:$0xff] %v270_v14  ;;  %v239_v25 = vmul.f32 %v430_v0, %v200_v11  ;;  %303 = vst [vmem:[%s454_s24 + $0xb0] sm:$0xff] %v271_v17  ;;  %v273_v26 = vadd.f32 %v440_v1, %v234_v18  ;;  %v274_v27 = vadd.f32 %v440_v1, %v235_v19 }
  0x22   : > { %v275_v28 = vadd.f32 %v440_v1, %v236_v20  ;;  %v240_v29 = vmul.f32 %v430_v0, %v201_v16  ;;  %304 = vst [vmem:[%s454_s24 + $0xb8] sm:$0xff] %v272_v22  ;;  %v276_v30 = vadd.f32 %v440_v1, %v237_v23  ;;  %v277_v31 = vadd.f32 %v440_v1, %v238_v24 }
  0x23   : > { %v278_v32 = vadd.f32 %v440_v1, %v239_v25  ;;  %v241_v33 = vmul.f32 %v430_v0, %v202_v21  ;;  %305 = vst [vmem:[%s454_s24 + $0xc0] sm:$0xff] %v273_v26  ;;  %306 = vst [vmem:[%s454_s24 + $0xc8] sm:$0xff] %v274_v27 }
  0x24   : > { %307 = vst [vmem:[%s454_s24 + $0xd0] sm:$0xff] %v275_v28  ;;  %v279_v34 = vadd.f32 %v440_v1, %v240_v29  ;;  %308 = vst [vmem:[%s454_s24 + $0xd8] sm:$0xff] %v276_v30 }
  0x25   : > { %309 = vst [vmem:[%s454_s24 + $0xe0] sm:$0xff] %v277_v31  ;;  %310 = vst [vmem:[%s454_s24 + $0xe8] sm:$0xff] %v278_v32  ;;  %v280_v35 = vadd.f32 %v440_v1, %v241_v33 }
  0x26   : > { %311 = vst [vmem:[%s454_s24 + $0xf0] sm:$0xff] %v279_v34 }
  0x27   : > { %312 = vst [vmem:[%s454_s24 + $0xf8] sm:$0xff] %v280_v35 }
  0x28 PF: > { %s13_s12 = sadd.s32 1, %s397_s12  }
  0x29   : > { %p10_p4 = scmp.ge.s32.totalorder %s13_s12, 4  }
  0x2b   :  { %12 = sbr.rel (!%p10_p4) target bundleno = 1 (0x1), region = 62 }

// kernel: unet_skip_innermost.2
= control target key start
LH: loop header
LB: loop body
LE: loop exit
PB: predicated region body
PF: predicated region fallthrough
CT: control target
= control target key end

     0   :  { %s3821_s21 = smov 0   ;;  %s4730_s0 = inlined_call_operand.vmem [shape: bf16[2,9,9,128], index: 0, kind: input, shape index: {}]   ;;  %s4731_s1 = inlined_call_operand.vmem [shape: bf16[512,128], index: 1, kind: input, shape index: {}]   ;;  %s4732_s2 = inlined_call_operand.vmem [shape: f32[1,128], index: 2, kind: input, shape index: {}]   ;;  %s4733_s3 = inlined_call_operand.vmem [shape: bf16[4,512,128], index: 3, kind: input, shape index: {}]   ;;  %s4734_s4 = inlined_call_operand.vmem [shape: f32[1,128], index: 4, kind: input, shape index: {}]   ;;  %s4735_s5 = inlined_call_operand.vmem [shape: f32[2,4,64,128], index: 5, kind: output, shape index: {0}]   ;;  %s4736_s6 = inlined_call_operand.vmem [shape: f32[2,128], index: 6, kind: output, shape index: {1}]  }
   0x1 LB: > { %s2814_s22 = sadd.s32 4294967295, %s3783_s21   ;;  %p2818_p0 = scmp.ge.s32.totalorder %s3783_s21, 1  ;;  %s3783_s21 = sphi %s3821_s21, %s17_s21  }
   0x2   : > { %p210_p1 = scmp.lt.s32.totalorder %s3783_s21, 3 }
   0x4   : > { %p211_p2 = pnand %p2818_p0, %p210_p1 }
   0x5   : > { %p240_p3 = scmp.lt.s32.totalorder (!%p211_p2), %s2814_s22, 1  ;;  %p2822_p4 = scmp.ne.s32.totalorder (!%p211_p2), %s2814_s22, 0 }
   0x6   : > { %214 = sbr.rel (%p211_p2) target bundleno = 659 (0x293), region = 40 }
   0xd   : > { %s241_s23 = scalar_select %p240_p3, %s2814_s22, 1 }
   0xe   : > { %254 = sbr.rel (%p2822_p4) target bundleno = 26 (0x1a), region = 44  ;;  %v3785_v0 = vmov (!%p2822_p4), 0.0  }
   0xf   : > { %s3607_s24 = smul.u32 72, %s241_s23  ;;  %s3206_s25 = sshll.u32 %s241_s23, 8  ;;  %255 = vst [vmem:[%s4736_s6] sm:$0x3] (!%p2822_p4), %v3785_v0  ;;  %256 = vst [vmem:[#allocation2] sm:$0xff] (!%p2822_p4), %v3785_v0 }
  0x10   : > { %s3832_s28 = scalar_lea.vmem %s4735_s5, %s3206_s25  ;;  %257 = vst [vmem:[#allocation2 + $0x8] sm:$0x3] (!%p2822_p4), %v3785_v0  ;;  %258 = vst [vmem:[#allocation2 + $0x10] sm:$0xff] (!%p2822_p4), %v3785_v0 }
  0x11   : > { %s3837_s7 = scalar_lea.vmem %s4730_s0, %s3607_s24  ;;  %259 = vst [vmem:[#allocation2 + $0x18] sm:$0x3] (!%p2822_p4), %v3785_v0  ;;  %260 = vst [vmem:[#allocation2 + $0x20] sm:$0xff] (!%p2822_p4), %v3785_v0 }
  0x12   : > { %261 = vst [vmem:[#allocation2 + $0x28] sm:$0x3] (!%p2822_p4), %v3785_v0  ;;  %262 = vst [vmem:[#allocation2 + $0x30] sm:$0xff] (!%p2822_p4), %v3785_v0 }
  0x13   : > { %263 = vst [vmem:[#allocation2 + $0x38] sm:$0x3] (!%p2822_p4), %v3785_v0  ;;  %264 = vst [vmem:[#allocation2 + $0x40] sm:$0xff] (!%p2822_p4), %v3785_v0 }
  0x14   : > { %265 = vst [vmem:[#allocation2 + $0x48] sm:$0x3] (!%p2822_p4), %v3785_v0  ;;  %266 = vst [vmem:[#allocation2 + $0x50] sm:$0xff] (!%p2822_p4), %v3785_v0 }
  0x15   : > { %267 = vst [vmem:[#allocation2 + $0x58] sm:$0x3] %v3785_v0  ;;  %268 = vst [vmem:[#allocation2 + $0x60] sm:$0xff] %v3785_v0 }
  0x16   : > { %269 = vst [vmem:[#allocation2 + $0x68] sm:$0x3] %v3785_v0  ;;  %270 = vst [vmem:[#allocation2 + $0x70] sm:$0xff] %v3785_v0 }
  0x17   : > { %271 = vst [vmem:[#allocation2 + $0x78] sm:$0x3] %v3785_v0  ;;  %272 = vst [vmem:[#allocation2 + $0x80] sm:$0xff] %v3785_v0 }
  0x18   : > { %273 = vst [vmem:[#allocation2 + $0x88] sm:$0x3] %v3785_v0  ;;  %274 = vst [vmem:[#allocation2 + $0x90] sm:$0xff] %v3785_v0 }
  0x19   : > { %275 = vst [vmem:[#allocation2 + $0x98] sm:$0x3] %v3785_v0 }
  0x1a PF: > { %v3617_v1 = vld [vmem:[%s4731_s1 + $0x40] sm:$0xff]   ;;  %v3621_v5 = vld [vmem:[%s4731_s1 + $0x48] sm:$0xff]   ;;  %v3625_v9 = vld [vmem:[%s4731_s1 + $0x50] sm:$0xff]   ;;  %vm382_vm0 = vcmask 1046528  }
  0x1b   : > { %v3618_v2 = vld [vmem:[%s4731_s1 + $0xc0] sm:$0xff]   ;;  %3207 = vmatprep.subr.bf16.mxu0 %v3617_v1  ;;  %v3622_v6 = vld [vmem:[%s4731_s1 + $0xc8] sm:$0xff]   ;;  %v3626_v10 = vld [vmem:[%s4731_s1 + $0xd0] sm:$0xff]  }
  0x1c   : > { %v3619_v3 = vld [vmem:[%s4731_s1] sm:$0xff]   ;;  %3247 = vmatprep.subr.bf16.mxu1 %v3618_v2  ;;  %v3623_v7 = vld [vmem:[%s4731_s1 + $0x8] sm:$0xff]   ;;  %v3627_v11 = vld [vmem:[%s4731_s1 + $0x10] sm:$0xff]  }
  0x1d   : > { %v3620_v4 = vld [vmem:[%s4731_s1 + $0x80] sm:$0xff]   ;;  %3208 = vmatpush3.bf16.msra.mxu0 %v3619_v3  ;;  %v3624_v8 = vld [vmem:[%s4731_s1 + $0x88] sm:$0xff]   ;;  %v3628_v12 = vld [vmem:[%s4731_s1 + $0x90] sm:$0xff]  }
  0x1e   : > { %3248 = vmatpush3.bf16.msra.mxu1 %v3620_v4  ;;  %3209 = vmatprep.subr.bf16.mxu0 %v3621_v5  ;;  %v3629_v13 = vld [vmem:[%s4731_s1 + $0x58] sm:$0xff]   ;;  %v3633_v17 = vld [vmem:[%s4731_s1 + $0x60] sm:$0xff]   ;;  %v3637_v21 = vld [vmem:[%s4731_s1 + $0x68] sm:$0xff]  }
  0x1f   : > { %3249 = vmatprep.subr.bf16.mxu1 %v3622_v6  ;;  %v3630_v14 = vld [vmem:[%s4731_s1 + $0xd8] sm:$0xff]   ;;  %v3634_v18 = vld [vmem:[%s4731_s1 + $0xe0] sm:$0xff]   ;;  %v3638_v22 = vld [vmem:[%s4731_s1 + $0xe8] sm:$0xff]  }
  0x20   : > { %v3631_v15 = vld [vmem:[%s4731_s1 + $0x18] sm:$0xff]   ;;  %v3635_v19 = vld [vmem:[%s4731_s1 + $0x20] sm:$0xff]   ;;  %v3639_v23 = vld [vmem:[%s4731_s1 + $0x28] sm:$0xff]  }
  0x21   : > { %3210 = vmatpush3.bf16.msra.mxu0 %v3623_v7  ;;  %v3632_v16 = vld [vmem:[%s4731_s1 + $0x98] sm:$0xff]   ;;  %v3636_v20 = vld [vmem:[%s4731_s1 + $0xa0] sm:$0xff]   ;;  %v3640_v24 = vld [vmem:[%s4731_s1 + $0xa8] sm:$0xff]  }
  0x22   : > { %3250 = vmatpush3.bf16.msra.mxu1 %v3624_v8  ;;  %3211 = vmatprep.subr.bf16.mxu0 %v3625_v9  ;;  %v3641_v25 = vld [vmem:[%s4731_s1 + $0x70] sm:$0xff]   ;;  %v3645_v29 = vld [vmem:[%s4731_s1 + $0x78] sm:$0xff]   ;;  %v276_v33 = vld [vmem:[%s3837_s7] ss:$8 sps:$4 sm:$0xff]  }
  0x23   : > { %3251 = vmatprep.subr.bf16.mxu1 %v3626_v10  ;;  %v3642_v26 = vld [vmem:[%s4731_s1 + $0xf0] sm:$0xff]   ;;  %v3646_v30 = vld [vmem:[%s4731_s1 + $0xf8] sm:$0xff]   ;;  %v277_v34 = vld [vmem:[%s3837_s7 + $0x4] sm:$0x1]  ;;  %v294_v36 = vunpack.c.l.bf16 %v276_v33  ;;  %v296_v38 = vunpack.c.h.bf16 %v276_v33 }
  0x24   : > { %v3643_v27 = vld [vmem:[%s4731_s1 + $0x30] sm:$0xff]   ;;  %v3647_v31 = vld [vmem:[%s4731_s1 + $0x38] sm:$0xff]   ;;  %v279_v35 = vld [vmem:[%s3837_s7 + $0xc] sm:$0x1]  ;;  %v295_v37 = vunpack.c.l.bf16 %v277_v34 }
  0x25   : > { %3212 = vmatpush3.bf16.msra.mxu0 %v3627_v11  ;;  %v3644_v28 = vld [vmem:[%s4731_s1 + $0xb0] sm:$0xff]   ;;  %v3648_v32 = vld [vmem:[%s4731_s1 + $0xb8] sm:$0xff]   ;;  %v297_v39 = vunpack.c.l.bf16 %v279_v35  ;;  %v284_v47 = vld [vmem:[%s3837_s7 + $0x20] ss:$8 sps:$4 sm:$0xff]   ;;  %vm312_vm1 = vcmp.ge.f32.partialorder %v294_v36, 0.0  ;;  %vm314_vm3 = vcmp.ge.f32.partialorder %v296_v38, 0.0 }
  0x26   : > { %3252 = vmatpush3.bf16.msra.mxu1 %v3628_v12  ;;  %3213 = vmatprep.subr.bf16.mxu0 %v3629_v13  ;;  %v280_v40 = vld [vmem:[%s3837_s7 + $0x10] ss:$8 sps:$4 sm:$0xff]   ;;  %v281_v41 = vld [vmem:[%s3837_s7 + $0x14] sm:$0x1]  ;;  %v283_v42 = vld [vmem:[%s3837_s7 + $0x1c] sm:$0x1]  ;;  %v302_v51 = vunpack.c.l.bf16 %v284_v47 }
  0x27   : > { %3253 = vmatprep.subr.bf16.mxu1 %v3630_v14  ;;  %v298_v43 = vunpack.c.l.bf16 %v280_v40  ;;  %v299_v44 = vunpack.c.l.bf16 %v281_v41  ;;  %v300_v45 = vunpack.c.h.bf16 %v280_v40  ;;  %v301_v46 = vunpack.c.l.bf16 %v283_v42  ;;  %v3649_v53 = vld [vmem:[%s4733_s3 + $0x40] sm:$0xff]   ;;  %v287_v7 = vld [vmem:[%s3837_s7 + $0x2c] sm:$0x1]  ;;  %v3657_v40 = vld [vmem:[%s4733_s3 + $0x50] sm:$0xff]  }
  0x28   : > { %vm313_vm2 = vcmp.ge.f32.partialorder %v295_v37, 0.0  ;;  %vm315_vm4 = vcmp.ge.f32.partialorder %v297_v39, 0.0  ;;  %v330_v48 = vmul.f32 0.2, %v294_v36  ;;  %v331_v49 = vmul.f32 0.2, %v295_v37 }
  0x29   : > { %3214 = vmatpush3.bf16.msra.mxu0 %v3631_v15  ;;  %v332_v50 = vmul.f32 0.2, %v296_v38  ;;  %v333_v52 = vmul.f32 0.2, %v297_v39  ;;  %vm316_vm5 = vcmp.ge.f32.partialorder %v298_v43, 0.0  ;;  %vm317_vm6 = vcmp.ge.f32.partialorder %v299_v44, 0.0 }
  0x2a   : > { %3254 = vmatpush3.bf16.msra.mxu1 %v3632_v16  ;;  %3215 = vmatprep.subr.bf16.mxu0 %v3633_v17  ;;  %vm318_vm7 = vcmp.ge.f32.partialorder %v300_v45, 0.0  ;;  %v348_v54 = vsel %vm312_vm1, %v294_v36, %v330_v48  ;;  %v349_v55 = vsel %vm313_vm2, %v295_v37, %v331_v49  ;;  %vm319_vm8 = vcmp.ge.f32.partialorder %v301_v46, 0.0  ;;  %v285_v57 = vld [vmem:[%s3837_s7 + $0x24] sm:$0x1] }
  0x2b   : > { %3255 = vmatprep.subr.bf16.mxu1 %v3634_v18  ;;  %v3948_v56 = vsel %vm314_vm3, %v296_v38, %v332_v50  ;;  %v351_v58 = vsel %vm315_vm4, %v297_v39, %v333_v52  ;;  %v383_v59 = vrot.slane %v348_v54, 1  ;;  %v384_v60 = vrot.slane %v349_v55, 1  ;;  %v3651_v62 = vld [vmem:[%s4733_s3 + $0xc0] sm:$0xff]   ;;  %v3656_v52 = vld [vmem:[%s4733_s3 + $0x88] sm:$0xff]  }
  0x2c   : > { %v386_v61 = vrot.slane %v3948_v56, 1  ;;  %v387_v63 = vrot.slane %v351_v58, 1  ;;  %v334_v0 = vmul.f32 0.2, %v298_v43  ;;  %v335_v1 = vmul.f32 0.2, %v299_v44 }
  0x2d   : > { %3216 = vmatpush3.bf16.msra.mxu0 %v3635_v19  ;;  %v421_v2 = vpack.c.bf16 %v3948_v56, %v348_v54  ;;  %v385_v3 = vsel %vm382_vm0, %v383_v59, %v384_v60  ;;  %v336_v4 = vmul.f32 0.2, %v300_v45  ;;  %v337_v5 = vmul.f32 0.2, %v301_v46  ;;  %v3650_v15 = vld [vmem:[%s4733_s3] sm:$0xff]  }
  0x2e   : > { %3256 = vmatpush3.bf16.msra.mxu1 %v3636_v20  ;;  %3217 = vmatprep.subr.bf16.mxu0 %v3637_v21  ;;  %v303_v6 = vunpack.c.l.bf16 %v285_v57  ;;  %v388_v8 = vsel %vm382_vm0, %v386_v61, %v387_v63  ;;  %v3960_v9 = vsel %vm316_vm5, %v298_v43, %v334_v0  ;;  %v353_v10 = vsel %vm317_vm6, %v299_v44, %v335_v1  ;;  %v288_v19 = vld [vmem:[%s3837_s7 + $0x30] ss:$8 sps:$4 sm:$0xff]   ;;  %v3653_v20 = vld [vmem:[%s4733_s3 + $0x48] sm:$0xff]  }
  0x2f   : > { %3257 = vmatprep.subr.bf16.mxu1 %v3638_v22  ;;  %vm320_vm9 = vcmp.ge.f32.partialorder %v302_v51, 0.0  ;;  %v422_v11 = vpack.c.bf16 %v388_v8, %v385_v3  ;;  %v3964_v12 = vsel %vm318_vm7, %v300_v45, %v336_v4  ;;  %v355_v13 = vsel %vm319_vm8, %v301_v46, %v337_v5 }
  0x30   : > { %v389_v14 = vrot.slane %v3960_v9, 1  ;;  %v390_v16 = vrot.slane %v353_v10, 1  ;;  %v392_v17 = vrot.slane %v3964_v12, 1  ;;  %v393_v18 = vrot.slane %v355_v13, 1 }
  0x31   : > { %3218 = vmatpush3.bf16.msra.mxu0 %v3639_v23  ;;  %732 = vmatprep.mubr.bf16.mxu0 %v422_v11  ;;  %v423_v21 = vpack.c.bf16 %v3960_v9, %v3948_v56  ;;  %vm321_vm10 = vcmp.ge.f32.partialorder %v303_v6, 0.0  ;;  %v338_v22 = vmul.f32 0.2, %v302_v51  ;;  %v339_v23 = vmul.f32 0.2, %v303_v6 }
  0x32   : > { %3258 = vmatpush3.bf16.msra.mxu1 %v3640_v24  ;;  %3219 = vmatprep.subr.bf16.mxu0 %v3641_v25  ;;  %v289_v24 = vld [vmem:[%s3837_s7 + $0x34] sm:$0x1]  ;;  %v291_v25 = vld [vmem:[%s3837_s7 + $0x3c] sm:$0x1]  ;;  %v425_v39 = vpack.c.bf16 %v3964_v12, %v3960_v9  ;;  %v306_v43 = vunpack.c.l.bf16 %v288_v19  ;;  %v308_v46 = vunpack.c.h.bf16 %v288_v19  ;;  %v293_v56 = vld [vmem:[%s3837_s7 + $0x44] sm:$0x1] }
  0x33   : > { %3259 = vmatprep.subr.bf16.mxu1 %v3642_v26  ;;  %v3652_v26 = vld [vmem:[%s4733_s3 + $0x80] sm:$0xff]   ;;  %v3992_v35 = vsel %vm320_vm9, %v302_v51, %v338_v22  ;;  %v357_v36 = vsel %vm321_vm10, %v303_v6, %v339_v23  ;;  %v307_v45 = vunpack.c.l.bf16 %v289_v24 }
  0x34   : > { %v395_v37 = vrot.slane %v3992_v35, 1  ;;  %v396_v38 = vrot.slane %v357_v36, 1  ;;  %vm324_vm13 = vcmp.ge.f32.partialorder %v306_v43, 0.0  ;;  %v292_v51 = vld [vmem:[%s3837_s7 + $0x40] sm:$0xf]  ;;  %v427_v57 = vpack.c.bf16 %v3992_v35, %v3964_v12  ;;  %v3669_v36 = vld [vmem:[%s4733_s3 + $0x68] sm:$0xff]  }
  0x35   : > { %3220 = vmatpush3.bf16.msra.mxu0 %v3643_v27  ;;  %v3654_v27 = vld [vmem:[%s4733_s3 + $0x8] sm:$0xff]   ;;  %vm325_vm14 = vcmp.ge.f32.partialorder %v307_v45, 0.0  ;;  %v342_v55 = vmul.f32 0.2, %v306_v43  ;;  %v343_v58 = vmul.f32 0.2, %v307_v45  ;;  %v310_v5 = vunpack.c.l.bf16 %v292_v51 }
  0x36   : > { %3260 = vmatpush3.bf16.msra.mxu1 %v3644_v28  ;;  %3221 = vmatprep.subr.bf16.mxu0 %v3645_v29  ;;  %v391_v28 = vsel %vm382_vm0, %v389_v14, %v390_v16  ;;  %v394_v29 = vsel %vm382_vm0, %v392_v17, %v393_v18  ;;  %v397_v44 = vsel %vm382_vm0, %v395_v37, %v396_v38  ;;  %vm326_vm15 = vcmp.ge.f32.partialorder %v308_v46, 0.0  ;;  %v3670_v37 = vld [vmem:[%s4733_s3 + $0x28] sm:$0xff]   ;;  %v4094_v51 = vld [vmem:[%s4732_s2] ss:$0 sm:$0xff] }
  0x37   : > { %3261 = vmatprep.subr.bf16.mxu1 %v3646_v30  ;;  %v304_v30 = vunpack.c.h.bf16 %v284_v47  ;;  %v424_v33 = vpack.c.bf16 %v391_v28, %v388_v8  ;;  %v426_v34 = vpack.c.bf16 %v394_v29, %v391_v28  ;;  %v309_v47 = vunpack.c.l.bf16 %v291_v25  ;;  %v3658_v25 = vld [vmem:[%s4733_s3 + $0x10] sm:$0xff]   ;;  %v3661_v28 = vld [vmem:[%s4733_s3 + $0x58] sm:$0xff]   ;;  %v3671_v38 = vld [vmem:[%s4733_s3 + $0xe8] sm:$0xff]  }
  0x38   : > { %v428_v48 = vpack.c.bf16 %v397_v44, %v394_v29  ;;  %v360_v60 = vsel %vm324_vm13, %v306_v43, %v342_v55  ;;  %v344_v61 = vmul.f32 0.2, %v308_v46  ;;  %v361_v0 = vsel %vm325_vm14, %v307_v45, %v343_v58  ;;  %v3662_v29 = vld [vmem:[%s4733_s3 + $0x18] sm:$0xff]   ;;  %v3676_v43 = vld [vmem:[%s4733_s3 + $0xb0] sm:$0xff]  }
  0x39   : > { %3222 = vmatpush3.bf16.msra.mxu0 %v3647_v31  ;;  %v305_v31 = vunpack.c.l.bf16 %v287_v7  ;;  %vm322_vm11 = vcmp.ge.f32.partialorder %v304_v30, 0.0  ;;  %797 = vmatprep.mubr.bf16.mxu1 %v424_v33  ;;  %v340_v41 = vmul.f32 0.2, %v304_v30  ;;  %vm327_vm1 = vcmp.ge.f32.partialorder %v309_v47, 0.0  ;;  %v3666_v33 = vld [vmem:[%s4733_s3 + $0x20] sm:$0xff]   ;;  %v3678_v45 = vld [vmem:[%s4733_s3 + $0x38] sm:$0xff]  }
  0x3a   : > { %3262 = vmatpush3.bf16.msra.mxu1 %v3648_v32  ;;  %3287 = vmatprep.subr.bf16.mxu0 %v3649_v53  ;;  %v3655_v32 = vld [vmem:[%s4733_s3 + $0xc8] sm:$0xff]   ;;  %v401_v1 = vrot.slane %v360_v60, 1  ;;  %v362_v3 = vsel %vm326_vm15, %v308_v46, %v344_v61  ;;  %v311_v8 = vunpack.c.l.bf16 %v293_v56  ;;  %vm328_vm2 = vcmp.ge.f32.partialorder %v310_v5, 0.0  ;;  %v3679_v46 = vld [vmem:[%s4733_s3 + $0xf8] sm:$0xff]  }
  0x3b   : > { %3327 = vmatprep.subr.bf16.mxu1 %v3651_v62  ;;  %vm323_vm12 = vcmp.ge.f32.partialorder %v305_v31, 0.0  ;;  %v341_v42 = vmul.f32 0.2, %v305_v31  ;;  %v358_v49 = vsel %vm322_vm11, %v304_v30, %v340_v41  ;;  %v345_v62 = vmul.f32 0.2, %v309_v47  ;;  %v3663_v30 = vld [vmem:[%s4733_s3 + $0xd8] sm:$0xff]  }
  0x3c   : > { %733 = vmatmul.mubr.bf16.vlgmr.msra.gmra.mrb[0].mxu0 %v421_v2  ;;  %v398_v53 = vrot.slane %v358_v49, 1  ;;  %v402_v2 = vrot.slane %v361_v0, 1  ;;  %v404_v6 = vrot.slane %v362_v3, 1  ;;  %v429_v10 = vpack.c.bf16 %v358_v49, %v3992_v35  ;;  %v3668_v35 = vld [vmem:[%s4733_s3 + $0xa0] sm:$0xff]   ;;  %v3674_v41 = vld [vmem:[%s4733_s3 + $0x30] sm:$0xff]  }
  0x3d   : > { %3288 = vmatpush3.bf16.msra.mxu0 %v3650_v15  ;;  %740 = vmatprep.mubr.bf16.mxu0 %v426_v34  ;;  %v359_v50 = vsel %vm323_vm12, %v305_v31, %v341_v42  ;;  %v363_v4 = vsel %vm327_vm1, %v309_v47, %v345_v62  ;;  %v346_v11 = vmul.f32 0.2, %v310_v5  ;;  %vm329_vm3 = vcmp.ge.f32.partialorder %v311_v8, 0.0  ;;  %v3664_v31 = vld [vmem:[%s4733_s3 + $0x98] sm:$0xff]   ;;  %v3667_v34 = vld [vmem:[%s4733_s3 + $0xe0] sm:$0xff]   ;;  %v3675_v42 = vld [vmem:[%s4733_s3 + $0xf0] sm:$0xff]  }
  0x3e   : > { %3289 = vmatprep.subr.bf16.mxu0 %v3653_v20  ;;  %798 = vmatmul.mubr.bf16.vlgmr.msra.gmra.mrb[0].mxu1 %v423_v21  ;;  %v399_v54 = vrot.slane %v359_v50, 1  ;;  %v405_v7 = vrot.slane %v363_v4, 1  ;;  %v403_v9 = vsel %vm382_vm0, %v401_v1, %v402_v2  ;;  %v347_v14 = vmul.f32 0.2, %v311_v8  ;;  %v3680_v47 = vld [vmem:[%s4733_s3 + $0xb8] sm:$0xff]  }
  0x3f   : > { %3328 = vmatpush3.bf16.msra.mxu1 %v3652_v26  ;;  %805 = vmatprep.mubr.bf16.mxu1 %v428_v48  ;;  %v364_v16 = vsel %vm328_vm2, %v310_v5, %v346_v11  ;;  %v431_v19 = vpack.c.bf16 %v360_v60, %v358_v49  ;;  %v433_v23 = vpack.c.bf16 %v362_v3, %v360_v60  ;;  %v3659_v26 = vld [vmem:[%s4733_s3 + $0xd0] sm:$0xff]   ;;  %v3681_v48 = vld [vmem:[%s4733_s3 + $0x140] sm:$0xff]  }
  0x40   : > { %3329 = vmatprep.subr.bf16.mxu1 %v3655_v32  ;;  %v400_v59 = vsel %vm382_vm0, %v398_v53, %v399_v54  ;;  %v406_v13 = vsel %vm382_vm0, %v404_v6, %v405_v7  ;;  %v365_v17 = vsel %vm329_vm3, %v311_v8, %v347_v14  ;;  %v417_v18 = vrot.slane %v364_v16, 1  ;;  %v3665_v32 = vld [vmem:[%s4733_s3 + $0x60] sm:$0xff]  }
  0x41   : > { %3290 = vmatpush3.bf16.msra.mxu0 %v3654_v27  ;;  %v430_v63 = vpack.c.bf16 %v400_v59, %v397_v44  ;;  %v432_v12 = vpack.c.bf16 %v403_v9, %v400_v59  ;;  %v434_v15 = vpack.c.bf16 %v406_v13, %v403_v9  ;;  %v418_v20 = vrot.slane %v365_v17, 1  ;;  %v3660_v27 = vld [vmem:[%s4733_s3 + $0x90] sm:$0xff]   ;;  %v3677_v44 = vld [vmem:[%s4733_s3 + $0x78] sm:$0xff]   ;;  %v3683_v49 = vld [vmem:[%s4733_s3 + $0x1c0] sm:$0xff]  }
  0x42   : > { %3291 = vmatprep.subr.bf16.mxu0 %v3657_v40  ;;  %v435_v24 = vpack.c.bf16 %v364_v16, %v362_v3  ;;  %v3673_v40 = vld [vmem:[%s4733_s3 + $0x70] sm:$0xff]   ;;  %v847_v17 = vld [vmem:[#allocation2] sm:$0xff] }
  0x43   : > { %3330 = vmatpush3.bf16.msra.mxu1 %v3656_v52  ;;  %v419_v21 = vsel %vm382_vm0, %v417_v18, %v418_v20  ;;  %v4100_v18 = vld [vmem:[#allocation2 + $0x8] sm:$0x3] }
  0x44   : > { %741 = vmatmul.mubr.bf16.gmra.mrb[4].mxu0 %v425_v39  ;;  %v436_v22 = vpack.c.bf16 %v419_v21, %v406_v13  ;;  %3331 = vmatprep.subr.bf16.mxu1 %v3659_v26  ;;  %v3672_v39 = vld [vmem:[%s4733_s3 + $0xa8] sm:$0xff]  }
  0x45   : > { %748 = vmatprep.mubr.bf16.mxu0 %v430_v63  ;;  %3292 = vmatpush3.bf16.msra.mxu0 %v3658_v25  ;;  %v884_v25 = vrot.slane %v4100_v18, 1  ;;  %v3702_v18 = vld [vmem:[%s4733_s3 + $0x128] sm:$0xff]  }
  0x46   : > { %806 = vmatmul.mubr.bf16.gmra.mrb[4].mxu1 %v427_v57  ;;  %3293 = vmatprep.subr.bf16.mxu0 %v3661_v28 }
  0x47   : > { %813 = vmatprep.mubr.bf16.mxu1 %v432_v12  ;;  %3332 = vmatpush3.bf16.msra.mxu1 %v3660_v27 }
  0x48   : > { %3333 = vmatprep.subr.bf16.mxu1 %v3663_v30 }
  0x49   : > { %3294 = vmatpush3.bf16.msra.mxu0 %v3662_v29 }
  0x4a   : > { %3295 = vmatprep.subr.bf16.mxu0 %v3665_v32 }
  0x4b   : > { %3334 = vmatpush3.bf16.msra.mxu1 %v3664_v31 }
  0x4c   : > { %749 = vmatmul.mubr.bf16.gmra.mrb[8].mxu0 %v429_v10  ;;  %3335 = vmatprep.subr.bf16.mxu1 %v3667_v34 }
  0x4d   : > { %756 = vmatprep.mubr.bf16.mxu0 %v434_v15  ;;  %3296 = vmatpush3.bf16.msra.mxu0 %v3666_v33 }
  0x4e   : > { %814 = vmatmul.mubr.bf16.gmra.mrb[8].mxu1 %v431_v19  ;;  %3297 = vmatprep.subr.bf16.mxu0 %v3669_v36 }
  0x4f   : > { %821 = vmatprep.mubr.bf16.mxu1 %v436_v22  ;;  %3336 = vmatpush3.bf16.msra.mxu1 %v3668_v35 }
  0x50   : > { %3337 = vmatprep.subr.bf16.mxu1 %v3671_v38 }
  0x51   : > { %3298 = vmatpush3.bf16.msra.mxu0 %v3670_v37 }
  0x52   : > { %3299 = vmatprep.subr.bf16.mxu0 %v3673_v40 }
  0x53   : > { %3338 = vmatpush3.bf16.msra.mxu1 %v3672_v39 }
  0x54   : > { %757 = vmatmul.mubr.bf16.gmra.mrb[12].mxu0 %v433_v23  ;;  %3339 = vmatprep.subr.bf16.mxu1 %v3675_v42 }
  0x55   : > { %3300 = vmatpush3.bf16.msra.mxu0 %v3674_v41 }
  0x56   : > { %822 = vmatmul.mubr.bf16.gmra.mrb[12].mxu1 %v435_v24  ;;  %3301 = vmatprep.subr.bf16.mxu0 %v3677_v44  ;;  %v883_v24 = vrot.slane %v847_v17, 1 }
  0x57   : > { %3340 = vmatpush3.bf16.msra.mxu1 %v3676_v43 }
  0x58   : > { %3341 = vmatprep.subr.bf16.mxu1 %v3679_v46  ;;  %v4109_v39 = vsel %vm382_vm0, %v883_v24, %v884_v25 }
  0x59   : > { %3302 = vmatpush3.bf16.msra.mxu0 %v3678_v45 }
  0x5a   : > { %3367 = vmatprep.subr.bf16.mxu0 %v3681_v48 }
  0x5b   : > { %3342 = vmatpush3.bf16.msra.mxu1 %v3680_v47 }
  0x5c   : > { %3407 = vmatprep.subr.bf16.mxu1 %v3683_v49 }
 0x10f   : > { %v3223_v50 = vpop.f32.mrb[0].mxu0 }
 0x110   : > { %v3224_v52 = vpop.f32.mrb[1].mxu0 }
 0x111   : > { %v3225_v53 = vadd.f32 %v3224_v52, %v3223_v50  ;;  %v3226_v54 = vpop.f32.mrb[2].mxu0  ;;  %v3263_v56 = vpop.f32.mrb[0].mxu1 }
 0x112   : > { %v3227_v55 = vpop.f32.mrb[3].mxu0  ;;  %v3264_v59 = vpop.f32.mrb[1].mxu1 }
 0x113   : > { %v735_v57 = vadd.f32 %v3225_v53, %v4094_v51  ;;  %v3228_v58 = vadd.f32 %v3227_v55, %v3226_v54  ;;  %v3265_v60 = vadd.f32 %v3264_v59, %v3263_v56  ;;  %v3266_v61 = vpop.f32.mrb[2].mxu1  ;;  %v3682_v55 = vld [vmem:[%s4733_s3 + $0x100] sm:$0xff]   ;;  %v3685_v59 = vld [vmem:[%s4733_s3 + $0x148] sm:$0xff]  }
 0x114   : > { %v3267_v63 = vpop.f32.mrb[3].mxu1 }
 0x115   : > { %v738_v62 = vadd.f32 %v3228_v58, %v4094_v51  ;;  %v800_v0 = vadd.f32 %v3265_v60, %v735_v57  ;;  %v3268_v1 = vadd.f32 %v3267_v63, %v3266_v61 }
 0x117   : > { %v3229_v2 = vpop.f32.mrb[4].mxu0  ;;  %v830_v4 = vmax.f32 %v800_v0, 0.0  ;;  %v803_v5 = vadd.f32 %v3268_v1, %v738_v62  ;;  %v3684_v1 = vld [vmem:[%s4733_s3 + $0x180] sm:$0xff]  }
 0x118   : > { %v3230_v3 = vpop.f32.mrb[5].mxu0 }
 0x119   : > { %v3231_v6 = vadd.f32 %v3230_v3, %v3229_v2  ;;  %v3232_v7 = vpop.f32.mrb[6].mxu0  ;;  %839 = vst [vmem:[#allocation2 + $0x11] sm:$0xff] %v830_v4  ;;  %v831_v9 = vmax.f32 %v803_v5, 0.0  ;;  %v3269_v10 = vpop.f32.mrb[4].mxu1  ;;  %v3687_v4 = vld [vmem:[%s4733_s3 + $0x1c8] sm:$0xff]  }
 0x11a   : > { %v3233_v8 = vpop.f32.mrb[7].mxu0  ;;  %v3270_v13 = vpop.f32.mrb[5].mxu1 }
 0x11b   : > { %v743_v11 = vadd.f32 %v3231_v6, %v4094_v51  ;;  %v3234_v12 = vadd.f32 %v3233_v8, %v3232_v7  ;;  %840 = vst [vmem:[#allocation2 + $0x21] sm:$0xff] %v831_v9  ;;  %v3271_v14 = vadd.f32 %v3270_v13, %v3269_v10  ;;  %v3272_v15 = vpop.f32.mrb[6].mxu1 }
 0x11c   : > { %v3273_v19 = vpop.f32.mrb[7].mxu1 }
 0x11d   : > { %v746_v16 = vadd.f32 %v3234_v12, %v4094_v51  ;;  %v808_v20 = vadd.f32 %v3271_v14, %v743_v11  ;;  %v3274_v21 = vadd.f32 %v3273_v19, %v3272_v15  ;;  %v3686_v11 = vld [vmem:[%s4733_s3 + $0x108] sm:$0xff]   ;;  %v3689_v15 = vld [vmem:[%s4733_s3 + $0x150] sm:$0xff]  }
 0x11f   : > { %v3235_v22 = vpop.f32.mrb[8].mxu0  ;;  %v832_v26 = vmax.f32 %v808_v20, 0.0  ;;  %v811_v27 = vadd.f32 %v3274_v21, %v746_v16 }
 0x120   : > { %v3236_v23 = vpop.f32.mrb[9].mxu0  ;;  %v849_v31 = vld [vmem:[#allocation2 + $0x10] sm:$0xff]  ;;  %v4103_v32 = vld [vmem:[#allocation2 + $0x18] sm:$0x3] }
 0x121   : > { %v3237_v28 = vadd.f32 %v3236_v23, %v3235_v22  ;;  %v3238_v29 = vpop.f32.mrb[10].mxu0  ;;  %841 = vst [vmem:[#allocation2 + $0x31] sm:$0xff] %v832_v26  ;;  %v833_v33 = vmax.f32 %v811_v27, 0.0  ;;  %v3275_v34 = vpop.f32.mrb[8].mxu1  ;;  %v886_v37 = vrot.slane %v849_v31, 1  ;;  %v887_v40 = vrot.slane %v4103_v32, 1 }
 0x122   : > { %v3239_v30 = vpop.f32.mrb[11].mxu0  ;;  %v3276_v38 = vpop.f32.mrb[9].mxu1  ;;  %v4112_v41 = vld [vmem:[#allocation2 + $0x20] sm:$0xff]  ;;  %v4114_v42 = vld [vmem:[#allocation2 + $0x28] sm:$0x3]  ;;  %v921_v56 = vpack.c.bf16 %v849_v31, %v847_v17 }
 0x123   : > { %v751_v35 = vadd.f32 %v3237_v28, %v4094_v51  ;;  %v3240_v36 = vadd.f32 %v3239_v30, %v3238_v29  ;;  %842 = vst [vmem:[#allocation2 + $0x41] sm:$0xff] %v833_v33  ;;  %v3277_v43 = vadd.f32 %v3276_v38, %v3275_v34  ;;  %v3278_v44 = vpop.f32.mrb[10].mxu1  ;;  %v889_v46 = vrot.slane %v4112_v41, 1  ;;  %v3688_v22 = vld [vmem:[%s4733_s3 + $0x188] sm:$0xff]   ;;  %v3690_v30 = vld [vmem:[%s4733_s3 + $0x110] sm:$0xff]  }
 0x124   : > { %v890_v47 = vrot.slane %v4114_v42, 1  ;;  %v3279_v48 = vpop.f32.mrb[11].mxu1  ;;  %v4122_v49 = vsel %vm382_vm0, %v886_v37, %v887_v40  ;;  %v4148_v2 = vpack.c.bf16 %v4112_v41, %v849_v31  ;;  %v3691_v33 = vld [vmem:[%s4733_s3 + $0x1d0] sm:$0xff]  }
 0x125   : > { %v754_v45 = vadd.f32 %v3240_v36, %v4094_v51  ;;  %v816_v50 = vadd.f32 %v3277_v43, %v751_v35  ;;  %v3280_v52 = vadd.f32 %v3279_v48, %v3278_v44  ;;  %v4126_v53 = vpack.c.bf16 %v4122_v49, %v4109_v39  ;;  %v3693_v36 = vld [vmem:[%s4733_s3 + $0x158] sm:$0xff]   ;;  %v3692_v43 = vld [vmem:[%s4733_s3 + $0x190] sm:$0xff]  }
 0x126   : > { %v4134_v58 = vsel %vm382_vm0, %v889_v46, %v890_v47  ;;  %v3695_v44 = vld [vmem:[%s4733_s3 + $0x1d8] sm:$0xff]  }
 0x127   : > { %v3241_v54 = vpop.f32.mrb[12].mxu0  ;;  %v834_v60 = vmax.f32 %v816_v50, 0.0  ;;  %v819_v61 = vadd.f32 %v3280_v52, %v754_v45  ;;  %1232 = vmatprep.mubr.bf16.mxu0 %v4126_v53  ;;  %v4142_v63 = vpack.c.bf16 %v4134_v58, %v4122_v49  ;;  %v3694_v50 = vld [vmem:[%s4733_s3 + $0x118] sm:$0xff]  }
 0x128   : > { %v3242_v57 = vpop.f32.mrb[13].mxu0  ;;  %1233 = vmatmul.mubr.bf16.vlgmr.msra.gmra.mrb[16].mxu0 %v921_v56  ;;  %v853_v5 = vld [vmem:[#allocation2 + $0x30] sm:$0xff]  ;;  %v4153_v6 = vld [vmem:[#allocation2 + $0x38] sm:$0x3] }
 0x129   : > { %v3243_v62 = vadd.f32 %v3242_v57, %v3241_v54  ;;  %v3244_v0 = vpop.f32.mrb[14].mxu0  ;;  %843 = vst [vmem:[#allocation2 + $0x51] sm:$0xff] %v834_v60  ;;  %v835_v7 = vmax.f32 %v819_v61, 0.0  ;;  %v3281_v8 = vpop.f32.mrb[12].mxu1  ;;  %3368 = vmatpush3.bf16.msra.mxu0 %v3682_v55  ;;  %1297 = vmatprep.mubr.bf16.mxu1 %v4142_v63  ;;  %v892_v12 = vrot.slane %v853_v5, 1  ;;  %v893_v14 = vrot.slane %v4153_v6, 1 }
 0x12a   : > { %v3245_v3 = vpop.f32.mrb[15].mxu0  ;;  %v3282_v13 = vpop.f32.mrb[13].mxu1  ;;  %1298 = vmatmul.mubr.bf16.vlgmr.msra.gmra.mrb[16].mxu1 %v4148_v2  ;;  %3369 = vmatprep.subr.bf16.mxu0 %v3685_v59  ;;  %v855_v16 = vld [vmem:[#allocation2 + $0x40] sm:$0xff]  ;;  %v4165_v17 = vld [vmem:[#allocation2 + $0x48] sm:$0x3]  ;;  %v4193_v34 = vpack.c.bf16 %v853_v5, %v4112_v41  ;;  %v3696_v59 = vld [vmem:[%s4733_s3 + $0x198] sm:$0xff]  }
 0x12b   : > { %v759_v9 = vadd.f32 %v3243_v62, %v4094_v51  ;;  %v3246_v10 = vadd.f32 %v3245_v3, %v3244_v0  ;;  %844 = vst [vmem:[#allocation2 + $0x61] sm:$0xff] %v835_v7  ;;  %v3283_v19 = vadd.f32 %v3282_v13, %v3281_v8  ;;  %v3284_v20 = vpop.f32.mrb[14].mxu1  ;;  %3408 = vmatpush3.bf16.msra.mxu1 %v3684_v1  ;;  %v895_v23 = vrot.slane %v855_v16, 1  ;;  %v3697_v55 = vld [vmem:[%s4733_s3 + $0x160] sm:$0xff]   ;;  %v3701_v8 = vld [vmem:[%s4733_s3 + $0x168] sm:$0xff]  }
 0x12c   : > { %v896_v24 = vrot.slane %v4165_v17, 1  ;;  %v3285_v26 = vpop.f32.mrb[15].mxu1  ;;  %3409 = vmatprep.subr.bf16.mxu1 %v3687_v4  ;;  %v4175_v27 = vsel %vm382_vm0, %v892_v12, %v893_v14  ;;  %v4208_v41 = vpack.c.bf16 %v855_v16, %v853_v5  ;;  %v3698_v1 = vld [vmem:[%s4733_s3 + $0x120] sm:$0xff]   ;;  %v1377_v12 = vrot.slane %v4122_v49, 1 }
 0x12d   : > { %v762_v21 = vadd.f32 %v3246_v10, %v4094_v51  ;;  %v824_v28 = vadd.f32 %v3283_v19, %v759_v9  ;;  %v3286_v29 = vadd.f32 %v3285_v26, %v3284_v20  ;;  %3370 = vmatpush3.bf16.msra.mxu0 %v3686_v11  ;;  %v4179_v51 = vpack.c.bf16 %v4175_v27, %v4134_v58  ;;  %v3699_v4 = vld [vmem:[%s4733_s3 + $0x1e0] sm:$0xff]   ;;  %v3705_v20 = vld [vmem:[%s4733_s3 + $0x170] sm:$0xff]  }
 0x12e   : > { %v4187_v31 = vsel %vm382_vm0, %v895_v23, %v896_v24  ;;  %3371 = vmatprep.subr.bf16.mxu0 %v3689_v15  ;;  %v1374_v9 = vrot.slane %v4109_v39, 1  ;;  %v3700_v10 = vld [vmem:[%s4733_s3 + $0x1a0] sm:$0xff]   ;;  %v1375_v11 = vrot.slane %v884_v25, 1  ;;  %v3703_v39 = vld [vmem:[%s4733_s3 + $0x1e8] sm:$0xff]   ;;  %v1378_v19 = vrot.slane %v887_v40, 1 }
 0x12f   : > { %v4197_v35 = vpack.c.bf16 %v4187_v31, %v4175_v27  ;;  %v836_v37 = vmax.f32 %v824_v28, 0.0  ;;  %v827_v38 = vadd.f32 %v3286_v29, %v762_v21  ;;  %3410 = vmatpush3.bf16.msra.mxu1 %v3688_v22  ;;  %1240 = vmatprep.mubr.bf16.mxu0 %v4179_v51  ;;  %v1381_v40 = vrot.slane %v890_v47, 1  ;;  %v3704_v22 = vld [vmem:[%s4733_s3 + $0x1a8] sm:$0xff]   ;;  %v3714_v17 = vld [vmem:[%s4733_s3 + $0x200] sm:$0xff]  }
 0x130   : > { %1241 = vmatmul.mubr.bf16.gmra.mrb[20].mxu0 %v4193_v34  ;;  %v857_v45 = vld [vmem:[#allocation2 + $0x50] sm:$0xff]  ;;  %v4213_v46 = vld [vmem:[#allocation2 + $0x58] sm:$0x3]  ;;  %3411 = vmatprep.subr.bf16.mxu1 %v3691_v33  ;;  %v1380_v29 = vrot.slane %v4134_v58, 1  ;;  %v1376_v47 = vsel %vm382_vm0, %v1374_v9, %v1375_v11  ;;  %v1387_v6 = vrot.slane %v896_v24, 1  ;;  %v3719_v11 = vld [vmem:[%s4733_s3 + $0x2c8] sm:$0xff]  }
 0x131   : > { %1305 = vmatprep.mubr.bf16.mxu1 %v4197_v35  ;;  %845 = vst [vmem:[#allocation2 + $0x71] sm:$0xff] %v836_v37  ;;  %v837_v48 = vmax.f32 %v827_v38, 0.0  ;;  %3372 = vmatpush3.bf16.msra.mxu0 %v3690_v30  ;;  %v898_v52 = vrot.slane %v857_v45, 1  ;;  %v899_v54 = vrot.slane %v4213_v46, 1  ;;  %v4250_v5 = vpack.c.bf16 %v857_v45, %v855_v16  ;;  %v3706_v33 = vld [vmem:[%s4733_s3 + $0x130] sm:$0xff]  }
 0x132   : > { %1306 = vmatmul.mubr.bf16.gmra.mrb[20].mxu1 %v4208_v41  ;;  %3373 = vmatprep.subr.bf16.mxu0 %v3693_v36  ;;  %v859_v56 = vld [vmem:[#allocation2 + $0x60] sm:$0xff]  ;;  %v4223_v57 = vld [vmem:[#allocation2 + $0x68] sm:$0x3]  ;;  %v1379_v30 = vsel %vm382_vm0, %v1377_v12, %v1378_v19  ;;  %v3707_v38 = vld [vmem:[%s4733_s3 + $0x1f0] sm:$0xff]  }
 0x133   : > { %846 = vst [vmem:[#allocation2 + $0x81] sm:$0xff] %v837_v48  ;;  %3412 = vmatpush3.bf16.msra.mxu1 %v3692_v43  ;;  %v4231_v60 = vsel %vm382_vm0, %v898_v52, %v899_v54  ;;  %v901_v61 = vrot.slane %v859_v56, 1  ;;  %v902_v62 = vrot.slane %v4223_v57, 1  ;;  %v4268_v13 = vpack.c.bf16 %v859_v56, %v857_v45  ;;  %v3709_v45 = vld [vmem:[%s4733_s3 + $0x178] sm:$0xff]   ;;  %v3718_v19 = vld [vmem:[%s4733_s3 + $0x208] sm:$0xff]   ;;  %v3722_v57 = vld [vmem:[%s4733_s3 + $0x210] sm:$0xff]  }
 0x134   : > { %3413 = vmatprep.subr.bf16.mxu1 %v3695_v44  ;;  %v4236_v0 = vpack.c.bf16 %v4231_v60, %v4187_v31  ;;  %v1410_v43 = vpack.c.bf16 %v1379_v30, %v1376_v47  ;;  %v3708_v44 = vld [vmem:[%s4733_s3 + $0x1b0] sm:$0xff]   ;;  %v1382_v48 = vsel %vm382_vm0, %v1380_v29, %v1381_v40  ;;  %v3711_v52 = vld [vmem:[%s4733_s3 + $0x1f8] sm:$0xff]   ;;  %v1389_v12 = vrot.slane %v4231_v60, 1 }
 0x135   : > { %3374 = vmatpush3.bf16.msra.mxu0 %v3694_v50  ;;  %v4244_v3 = vsel %vm382_vm0, %v901_v61, %v902_v62  ;;  %v4348_v61 = vpack.c.bf16 %v1382_v48, %v1379_v30  ;;  %v1393_v46 = vrot.slane %v902_v62, 1  ;;  %v3724_v40 = vld [vmem:[%s4733_s3 + $0x290] sm:$0xff]   ;;  %v3726_v30 = vld [vmem:[%s4733_s3 + $0x218] sm:$0xff]  }
 0x136   : > { %1248 = vmatprep.mubr.bf16.mxu0 %v4236_v0  ;;  %3375 = vmatprep.subr.bf16.mxu0 %v3697_v55  ;;  %v4254_v7 = vpack.c.bf16 %v4244_v3, %v4231_v60  ;;  %v1383_v55 = vrot.slane %v4175_v27, 1  ;;  %v1386_v27 = vrot.slane %v4187_v31, 1  ;;  %v3717_v31 = vld [vmem:[%s4733_s3 + $0x248] sm:$0xff]   ;;  %v1392_v60 = vrot.slane %v4244_v3, 1 }
 0x137   : > { %3414 = vmatpush3.bf16.msra.mxu1 %v3696_v59  ;;  %v3710_v59 = vld [vmem:[%s4733_s3 + $0x138] sm:$0xff]  }
 0x138   : > { %1249 = vmatmul.mubr.bf16.gmra.mrb[24].mxu0 %v4250_v5  ;;  %1313 = vmatprep.mubr.bf16.mxu1 %v4254_v7  ;;  %v861_v15 = vld [vmem:[#allocation2 + $0x70] sm:$0xff]  ;;  %v4273_v16 = vld [vmem:[#allocation2 + $0x78] sm:$0x3]  ;;  %v1388_v24 = vsel %vm382_vm0, %v1386_v27, %v1387_v6  ;;  %v1394_v62 = vsel %vm382_vm0, %v1392_v60, %v1393_v46 }
 0x139   : > { %3376 = vmatpush3.bf16.msra.mxu0 %v3698_v1  ;;  %3415 = vmatprep.subr.bf16.mxu1 %v3699_v4  ;;  %v904_v25 = vrot.slane %v861_v15, 1  ;;  %v905_v49 = vrot.slane %v4273_v16, 1  ;;  %v4317_v58 = vpack.c.bf16 %v861_v15, %v859_v56  ;;  %v1384_v56 = vrot.slane %v893_v14, 1  ;;  %v3713_v1 = vld [vmem:[%s4733_s3 + $0x240] sm:$0xff]   ;;  %v3712_v14 = vld [vmem:[%s4733_s3 + $0x1b8] sm:$0xff]   ;;  %v3739_v27 = vld [vmem:[%s4733_s3 + $0x2f0] sm:$0xff]  }
 0x13a   : > { %1314 = vmatmul.mubr.bf16.gmra.mrb[24].mxu1 %v4268_v13  ;;  %3377 = vmatprep.subr.bf16.mxu0 %v3701_v8  ;;  %v4285_v21 = vld [vmem:[#allocation2 + $0x80] sm:$0xff]  ;;  %v4287_v32 = vld [vmem:[#allocation2 + $0x88] sm:$0x3]  ;;  %v3738_v6 = vld [vmem:[%s4733_s3 + $0x230] sm:$0xff]  }
 0x13b   : > { %3416 = vmatpush3.bf16.msra.mxu1 %v3700_v10  ;;  %v4297_v23 = vsel %vm382_vm0, %v904_v25, %v905_v49  ;;  %v917_v26 = vrot.slane %v4285_v21, 1  ;;  %v918_v28 = vrot.slane %v4287_v32, 1  ;;  %v4336_v50 = vpack.c.bf16 %v4285_v21, %v861_v15  ;;  %v3715_v8 = vld [vmem:[%s4733_s3 + $0x2c0] sm:$0xff]   ;;  %v3723_v25 = vld [vmem:[%s4733_s3 + $0x2d0] sm:$0xff]  }
 0x13c   : > { %3417 = vmatprep.subr.bf16.mxu1 %v3703_v39  ;;  %v4304_v42 = vpack.c.bf16 %v4297_v23, %v4244_v3  ;;  %v1385_v4 = vsel %vm382_vm0, %v1383_v55, %v1384_v56  ;;  %v3716_v10 = vld [vmem:[%s4733_s3 + $0x280] sm:$0xff]   ;;  %v1390_v39 = vrot.slane %v899_v54, 1  ;;  %v3720_v54 = vld [vmem:[%s4733_s3 + $0x288] sm:$0xff]   ;;  %v3725_v3 = vld [vmem:[%s4733_s3 + $0x258] sm:$0xff]   ;;  %v1396_v29 = vrot.slane %v905_v49, 1 }
 0x13d   : > { %3378 = vmatpush3.bf16.msra.mxu0 %v3702_v18  ;;  %v4314_v36 = vsel %vm382_vm0, %v917_v26, %v918_v28  ;;  %v4371_v9 = vpack.c.bf16 %v1385_v4, %v1382_v48  ;;  %v4384_v15 = vpack.c.bf16 %v1388_v24, %v1385_v4  ;;  %v1395_v26 = vrot.slane %v4297_v23, 1  ;;  %v3728_v49 = vld [vmem:[%s4733_s3 + $0x298] sm:$0xff]   ;;  %v3730_v32 = vld [vmem:[%s4733_s3 + $0x220] sm:$0xff]   ;;  %v3734_v56 = vld [vmem:[%s4733_s3 + $0x228] sm:$0xff]  }
 0x13e   : > { %1256 = vmatprep.mubr.bf16.mxu0 %v4304_v42  ;;  %3379 = vmatprep.subr.bf16.mxu0 %v3705_v20  ;;  %v4321_v37 = vpack.c.bf16 %v4314_v36, %v4297_v23  ;;  %v1391_v18 = vsel %vm382_vm0, %v1389_v12, %v1390_v39  ;;  %v1398_v23 = vrot.slane %v4314_v36, 1  ;;  %v1399_v16 = vrot.slane %v918_v28, 1  ;;  %v3732_v48 = vld [vmem:[%s4733_s3 + $0x2a0] sm:$0xff]   ;;  %v3740_v4 = vld [vmem:[%s4733_s3 + $0x2b0] sm:$0xff]   ;;  %v3749_v12 = vld [vmem:[%s4733_s3 + $0x348] sm:$0xff]  }
 0x13f   : > { %3418 = vmatpush3.bf16.msra.mxu1 %v3704_v22  ;;  %v4411_v20 = vpack.c.bf16 %v1391_v18, %v1388_v24  ;;  %v3727_v22 = vld [vmem:[%s4733_s3 + $0x2d8] sm:$0xff]   ;;  %v4424_v47 = vpack.c.bf16 %v1394_v62, %v1391_v18  ;;  %v3745_v24 = vld [vmem:[%s4733_s3 + $0x340] sm:$0xff]   ;;  %v3753_v60 = vld [vmem:[%s4733_s3 + $0x350] sm:$0xff]  }
 0x140   : > { %1257 = vmatmul.mubr.bf16.gmra.mrb[28].mxu0 %v4317_v58  ;;  %1321 = vmatprep.mubr.bf16.mxu1 %v4321_v37  ;;  %v4448_v28 = vsel %vm382_vm0, %v1398_v23, %v1399_v16  ;;  %v3748_v39 = vld [vmem:[%s4733_s3 + $0x380] sm:$0xff]   ;;  %v3755_v46 = vld [vmem:[%s4733_s3 + $0x3d0] sm:$0xff]   ;;  %v3767_v16 = vld [vmem:[%s4733_s3 + $0x3e8] sm:$0xff]  }
 0x141   : > { %3380 = vmatpush3.bf16.msra.mxu0 %v3706_v33  ;;  %1714 = vmatprep.mubr.bf16.mxu0 %v1410_v43  ;;  %v3729_v33 = vld [vmem:[%s4733_s3 + $0x260] sm:$0xff]   ;;  %v3756_v18 = vld [vmem:[%s4733_s3 + $0x390] sm:$0xff]  }
 0x142   : > { %3419 = vmatprep.subr.bf16.mxu1 %v3707_v38  ;;  %1322 = vmatmul.mubr.bf16.gmra.mrb[28].mxu1 %v4336_v50  ;;  %v1397_v38 = vsel %vm382_vm0, %v1395_v26, %v1396_v29  ;;  %v3731_v43 = vld [vmem:[%s4733_s3 + $0x2e0] sm:$0xff]   ;;  %v3760_v26 = vld [vmem:[%s4733_s3 + $0x398] sm:$0xff]  }
 0x143   : > { %3420 = vmatpush3.bf16.msra.mxu1 %v3708_v44  ;;  %3381 = vmatprep.subr.bf16.mxu0 %v3709_v45  ;;  %v3733_v44 = vld [vmem:[%s4733_s3 + $0x268] sm:$0xff]   ;;  %v4453_v45 = vpack.c.bf16 %v1397_v38, %v1394_v62  ;;  %v4464_v55 = vpack.c.bf16 %v4448_v28, %v1397_v38  ;;  %v3759_v62 = vld [vmem:[%s4733_s3 + $0x3d8] sm:$0xff]   ;;  %v3762_v29 = vld [vmem:[%s4733_s3 + $0x320] sm:$0xff]  }
 0x144   : > { %1779 = vmatprep.mubr.bf16.mxu1 %v4348_v61  ;;  %3421 = vmatprep.subr.bf16.mxu1 %v3711_v52  ;;  %v3735_v52 = vld [vmem:[%s4733_s3 + $0x2e8] sm:$0xff]   ;;  %v3764_v23 = vld [vmem:[%s4733_s3 + $0x3a0] sm:$0xff]  }
 0x145   : > { %3382 = vmatpush3.bf16.msra.mxu0 %v3710_v59  ;;  %v3737_v59 = vld [vmem:[%s4733_s3 + $0x270] sm:$0xff]   ;;  %v3766_v38 = vld [vmem:[%s4733_s3 + $0x328] sm:$0xff]  }
 0x146   : > { %3447 = vmatprep.subr.bf16.mxu0 %v3713_v1  ;;  %v3736_v1 = vld [vmem:[%s4733_s3 + $0x2a8] sm:$0xff]  }
 0x147   : > { %3422 = vmatpush3.bf16.msra.mxu1 %v3712_v14  ;;  %v3741_v14 = vld [vmem:[%s4733_s3 + $0x278] sm:$0xff]  }
 0x148   : > { %1715 = vmatmul.mubr.bf16.vlgmr.msra.gmra.mrb[32].mxu0 %v4126_v53  ;;  %3487 = vmatprep.subr.bf16.mxu1 %v3715_v8  ;;  %v3721_v53 = vld [vmem:[%s4733_s3 + $0x250] sm:$0xff]   ;;  %v3743_v8 = vld [vmem:[%s4733_s3 + $0x2f8] sm:$0xff]  }
 0x149   : > { %3448 = vmatpush3.bf16.msra.mxu0 %v3714_v17  ;;  %1722 = vmatprep.mubr.bf16.mxu0 %v4371_v9  ;;  %v3742_v17 = vld [vmem:[%s4733_s3 + $0x238] sm:$0xff]  }
 0x14a   : > { %1780 = vmatmul.mubr.bf16.vlgmr.msra.gmra.mrb[32].mxu1 %v4142_v63  ;;  %3449 = vmatprep.subr.bf16.mxu0 %v3717_v31  ;;  %v3744_v31 = vld [vmem:[%s4733_s3 + $0x2b8] sm:$0xff]  }
 0x14b   : > { %3488 = vmatpush3.bf16.msra.mxu1 %v3716_v10  ;;  %1787 = vmatprep.mubr.bf16.mxu1 %v4384_v15  ;;  %v3747_v10 = vld [vmem:[%s4733_s3 + $0x3c0] sm:$0xff]  }
 0x14c   : > { %3489 = vmatprep.subr.bf16.mxu1 %v3719_v11  ;;  %v3746_v11 = vld [vmem:[%s4733_s3 + $0x300] sm:$0xff]  }
 0x14d   : > { %3450 = vmatpush3.bf16.msra.mxu0 %v3718_v19  ;;  %v3751_v19 = vld [vmem:[%s4733_s3 + $0x3c8] sm:$0xff]  }
 0x14e   : > { %3451 = vmatprep.subr.bf16.mxu0 %v3721_v53  ;;  %v3750_v53 = vld [vmem:[%s4733_s3 + $0x308] sm:$0xff]  }
 0x14f   : > { %3490 = vmatpush3.bf16.msra.mxu1 %v3720_v54  ;;  %v3757_v54 = vld [vmem:[%s4733_s3 + $0x358] sm:$0xff]  }
 0x150   : > { %1723 = vmatmul.mubr.bf16.gmra.mrb[36].mxu0 %v4179_v51  ;;  %3491 = vmatprep.subr.bf16.mxu1 %v3723_v25  ;;  %v865_v25 = vld [vmem:[#allocation2 + $0x90] sm:$0xff] }
 0x151   : > { %3452 = vmatpush3.bf16.msra.mxu0 %v3722_v57  ;;  %1730 = vmatprep.mubr.bf16.mxu0 %v4411_v20  ;;  %v4545_v57 = vld [vmem:[#allocation2 + $0x98] sm:$0x3] }
 0x152   : > { %1788 = vmatmul.mubr.bf16.gmra.mrb[36].mxu1 %v4197_v35  ;;  %3453 = vmatprep.subr.bf16.mxu0 %v3725_v3  ;;  %v3758_v3 = vld [vmem:[%s4733_s3 + $0x318] sm:$0xff]  }
 0x153   : > { %3492 = vmatpush3.bf16.msra.mxu1 %v3724_v40  ;;  %1795 = vmatprep.mubr.bf16.mxu1 %v4424_v47  ;;  %v3761_v40 = vld [vmem:[%s4733_s3 + $0x360] sm:$0xff]  }
 0x154   : > { %3493 = vmatprep.subr.bf16.mxu1 %v3727_v22  ;;  %v1860_v22 = vrot.slane %v4545_v57, 1 }
 0x155   : > { %3454 = vmatpush3.bf16.msra.mxu0 %v3726_v30 }
 0x156   : > { %3455 = vmatprep.subr.bf16.mxu0 %v3729_v33  ;;  %v3765_v33 = vld [vmem:[%s4733_s3 + $0x368] sm:$0xff]  }
 0x157   : > { %3494 = vmatpush3.bf16.msra.mxu1 %v3728_v49 }
 0x158   : > { %1731 = vmatmul.mubr.bf16.gmra.mrb[40].mxu0 %v4236_v0  ;;  %3495 = vmatprep.subr.bf16.mxu1 %v3731_v43  ;;  %v3768_v43 = vld [vmem:[%s4733_s3 + $0x3a8] sm:$0xff]  }
 0x159   : > { %3456 = vmatpush3.bf16.msra.mxu0 %v3730_v32  ;;  %1738 = vmatprep.mubr.bf16.mxu0 %v4453_v45  ;;  %v3773_v32 = vld [vmem:[%s4733_s3 + $0x378] sm:$0xff]  }
 0x15a   : > { %1796 = vmatmul.mubr.bf16.gmra.mrb[40].mxu1 %v4254_v7  ;;  %3457 = vmatprep.subr.bf16.mxu0 %v3733_v44  ;;  %v3772_v44 = vld [vmem:[%s4733_s3 + $0x3b0] sm:$0xff]  }
 0x15b   : > { %3496 = vmatpush3.bf16.msra.mxu1 %v3732_v48  ;;  %1803 = vmatprep.mubr.bf16.mxu1 %v4464_v55  ;;  %v1863_v48 = vpack.c.bf16 %v865_v25, %v4285_v21  ;;  %v3776_v21 = vld [vmem:[%s4733_s3 + $0x3b8] sm:$0xff]  }
 0x15c   : > { %3497 = vmatprep.subr.bf16.mxu1 %v3735_v52  ;;  %v3775_v52 = vld [vmem:[%s4733_s3 + $0x3f8] sm:$0xff]  }
 0x15d   : > { %3458 = vmatpush3.bf16.msra.mxu0 %v3734_v56  ;;  %v3774_v56 = vld [vmem:[%s4733_s3 + $0x338] sm:$0xff]  }
 0x15e   : > { %3459 = vmatprep.subr.bf16.mxu0 %v3737_v59 }
 0x15f   : > { %3498 = vmatpush3.bf16.msra.mxu1 %v3736_v1 }
 0x160   : > { %1739 = vmatmul.mubr.bf16.gmra.mrb[44].mxu0 %v4304_v42  ;;  %3499 = vmatprep.subr.bf16.mxu1 %v3739_v27 }
 0x161   : > { %3460 = vmatpush3.bf16.msra.mxu0 %v3738_v6  ;;  %2161 = vmatprep.mubr.bf16.mxu0 %v4142_v63 }
 0x162   : > { %1804 = vmatmul.mubr.bf16.gmra.mrb[44].mxu1 %v4321_v37  ;;  %3461 = vmatprep.subr.bf16.mxu0 %v3741_v14 }
 0x163   : > { %3500 = vmatpush3.bf16.msra.mxu1 %v3740_v4  ;;  %2226 = vmatprep.mubr.bf16.mxu1 %v4179_v51 }
 0x164   : > { %3501 = vmatprep.subr.bf16.mxu1 %v3743_v8 }
 0x165   : > { %3462 = vmatpush3.bf16.msra.mxu0 %v3742_v17 }
 0x166   : > { %3527 = vmatprep.subr.bf16.mxu0 %v3745_v24 }
 0x167   : > { %3502 = vmatpush3.bf16.msra.mxu1 %v3744_v31 }
 0x168   : > { %2162 = vmatmul.mubr.bf16.vlgmr.msra.gmra.mrb[48].mxu0 %v4148_v2  ;;  %3567 = vmatprep.subr.bf16.mxu1 %v3747_v10  ;;  %v3752_v2 = vld [vmem:[%s4733_s3 + $0x388] sm:$0xff]  }
 0x169   : > { %3528 = vmatpush3.bf16.msra.mxu0 %v3746_v11  ;;  %2169 = vmatprep.mubr.bf16.mxu0 %v4197_v35 }
 0x16a   : > { %2227 = vmatmul.mubr.bf16.vlgmr.msra.gmra.mrb[48].mxu1 %v4193_v34  ;;  %3529 = vmatprep.subr.bf16.mxu0 %v3749_v12  ;;  %v3754_v34 = vld [vmem:[%s4733_s3 + $0x310] sm:$0xff]  }
 0x16b   : > { %3568 = vmatpush3.bf16.msra.mxu1 %v3748_v39  ;;  %2234 = vmatprep.mubr.bf16.mxu1 %v4236_v0 }
 0x16c   : > { %3569 = vmatprep.subr.bf16.mxu1 %v3751_v19 }
 0x16d   : > { %3530 = vmatpush3.bf16.msra.mxu0 %v3750_v53 }
 0x16e   : > { %3531 = vmatprep.subr.bf16.mxu0 %v3753_v60 }
 0x16f   : > { %3570 = vmatpush3.bf16.msra.mxu1 %v3752_v2 }
 0x170   : > { %2170 = vmatmul.mubr.bf16.gmra.mrb[52].mxu0 %v4208_v41  ;;  %3571 = vmatprep.subr.bf16.mxu1 %v3755_v46  ;;  %v1859_v41 = vrot.slane %v865_v25, 1 }
 0x171   : > { %3532 = vmatpush3.bf16.msra.mxu0 %v3754_v34  ;;  %2177 = vmatprep.mubr.bf16.mxu0 %v4254_v7 }
 0x172   : > { %2235 = vmatmul.mubr.bf16.gmra.mrb[52].mxu1 %v4250_v5  ;;  %3533 = vmatprep.subr.bf16.mxu0 %v3757_v54  ;;  %v3763_v5 = vld [vmem:[%s4733_s3 + $0x3e0] sm:$0xff]   ;;  %v1861_v30 = vsel %vm382_vm0, %v1859_v41, %v1860_v22 }
 0x173   : > { %3572 = vmatpush3.bf16.msra.mxu1 %v3756_v18  ;;  %2242 = vmatprep.mubr.bf16.mxu1 %v4304_v42  ;;  %v1864_v49 = vpack.c.bf16 %v1861_v30, %v4314_v36  ;;  %v3771_v36 = vld [vmem:[%s4733_s3 + $0x3f0] sm:$0xff]  }
 0x174   : > { %3573 = vmatprep.subr.bf16.mxu1 %v3759_v62 }
 0x175   : > { %3534 = vmatpush3.bf16.msra.mxu0 %v3758_v3 }
 0x176   : > { %3535 = vmatprep.subr.bf16.mxu0 %v3761_v40 }
 0x177   : > { %3574 = vmatpush3.bf16.msra.mxu1 %v3760_v26 }
 0x178   : > { %2178 = vmatmul.mubr.bf16.gmra.mrb[56].mxu0 %v4268_v13  ;;  %3575 = vmatprep.subr.bf16.mxu1 %v3763_v5  ;;  %v3769_v13 = vld [vmem:[%s4733_s3 + $0x370] sm:$0xff]  }
 0x179   : > { %3536 = vmatpush3.bf16.msra.mxu0 %v3762_v29  ;;  %2185 = vmatprep.mubr.bf16.mxu0 %v4321_v37 }
 0x17a   : > { %2243 = vmatmul.mubr.bf16.gmra.mrb[56].mxu1 %v4317_v58  ;;  %3537 = vmatprep.subr.bf16.mxu0 %v3765_v33  ;;  %v3770_v58 = vld [vmem:[%s4733_s3 + $0x330] sm:$0xff]  }
 0x17b   : > { %3576 = vmatpush3.bf16.msra.mxu1 %v3764_v23  ;;  %2250 = vmatprep.mubr.bf16.mxu1 %v1864_v49 }
 0x17c   : > { %3577 = vmatprep.subr.bf16.mxu1 %v3767_v16 }
 0x17d   : > { %3538 = vmatpush3.bf16.msra.mxu0 %v3766_v38 }
 0x17e   : > { %3539 = vmatprep.subr.bf16.mxu0 %v3769_v13 }
 0x17f   : > { %3578 = vmatpush3.bf16.msra.mxu1 %v3768_v43 }
 0x180   : > { %2186 = vmatmul.mubr.bf16.gmra.mrb[60].mxu0 %v4336_v50  ;;  %3579 = vmatprep.subr.bf16.mxu1 %v3771_v36  ;;  %v2304_v50 = vrot.slane %v1861_v30, 1 }
 0x181   : > { %3540 = vmatpush3.bf16.msra.mxu0 %v3770_v58  ;;  %2605 = vmatprep.mubr.bf16.mxu0 %v4348_v61  ;;  %v2305_v61 = vrot.slane %v1860_v22, 1 }
 0x182   : > { %2251 = vmatmul.mubr.bf16.gmra.mrb[60].mxu1 %v1863_v48  ;;  %3541 = vmatprep.subr.bf16.mxu0 %v3773_v32 }
 0x183   : > { %3580 = vmatpush3.bf16.msra.mxu1 %v3772_v44  ;;  %2670 = vmatprep.mubr.bf16.mxu1 %v4371_v9  ;;  %v2306_v9 = vsel %vm382_vm0, %v2304_v50, %v2305_v61  ;;  %vm2749_vm0 = vcmask 1040384  }
 0x184   : > { %3581 = vmatprep.subr.bf16.mxu1 %v3775_v52 }
 0x185   : > { %3542 = vmatpush3.bf16.msra.mxu0 %v3774_v56 }
 0x187   : > { %3582 = vmatpush3.bf16.msra.mxu1 %v3776_v21 }
 0x188   : > { %2606 = vmatmul.mubr.bf16.vlgmr.msra.gmra.mrb[64].mxu0 %v4142_v63  ;;  %v2308_v63 = vpack.c.bf16 %v2306_v9, %v4448_v28 }
 0x189   : > { %2613 = vmatprep.mubr.bf16.mxu0 %v4384_v15 }
 0x18a   : > { %2671 = vmatmul.mubr.bf16.vlgmr.msra.gmra.mrb[64].mxu1 %v4179_v51 }
 0x18b   : > { %2678 = vmatprep.mubr.bf16.mxu1 %v4411_v20 }
 0x190   : > { %2614 = vmatmul.mubr.bf16.gmra.mrb[68].mxu0 %v4197_v35  ;;  %v4635_v35 = vld [vmem:[%s4734_s4] ss:$0 sm:$0xff] }
 0x191   : > { %2621 = vmatprep.mubr.bf16.mxu0 %v4424_v47 }
 0x192   : > { %2679 = vmatmul.mubr.bf16.gmra.mrb[68].mxu1 %v4236_v0 }
 0x193   : > { %2686 = vmatprep.mubr.bf16.mxu1 %v4453_v45 }
 0x198   : > { %2622 = vmatmul.mubr.bf16.gmra.mrb[72].mxu0 %v4254_v7 }
 0x199   : > { %2629 = vmatprep.mubr.bf16.mxu0 %v4464_v55 }
 0x19a   : > { %2687 = vmatmul.mubr.bf16.gmra.mrb[72].mxu1 %v4304_v42 }
 0x19b   : > { %2694 = vmatprep.mubr.bf16.mxu1 %v2308_v63 }
 0x1a0   : > { %2630 = vmatmul.mubr.bf16.gmra.mrb[76].mxu0 %v4321_v37 }
 0x1a2   : > { %2695 = vmatmul.mubr.bf16.gmra.mrb[76].mxu1 %v1864_v49 }
 0x1fb   : > { %v3303_v51 = vpop.f32.mrb[16].mxu0 }
 0x1fc   : > { %v3304_v0 = vpop.f32.mrb[17].mxu0 }
 0x1fd   : > { %v3305_v15 = vadd.f32 %v3304_v0, %v3303_v51  ;;  %v3306_v7 = vpop.f32.mrb[18].mxu0  ;;  %v3343_v20 = vpop.f32.mrb[16].mxu1 }
 0x1fe   : > { %v3307_v47 = vpop.f32.mrb[19].mxu0  ;;  %v3344_v28 = vpop.f32.mrb[17].mxu1 }
 0x1ff   : > { %v1235_v42 = vadd.f32 %v3305_v15, %v4635_v35  ;;  %v3308_v45 = vadd.f32 %v3307_v47, %v3306_v7  ;;  %v3345_v55 = vadd.f32 %v3344_v28, %v3343_v20  ;;  %v3346_v37 = vpop.f32.mrb[18].mxu1 }
 0x200   : > { %v3347_v59 = vpop.f32.mrb[19].mxu1 }
 0x201   : > { %v1238_v1 = vadd.f32 %v3308_v45, %v4635_v35  ;;  %v1300_v27 = vadd.f32 %v3345_v55, %v1235_v42  ;;  %v3348_v6 = vadd.f32 %v3347_v59, %v3346_v37 }
 0x203   : > { %1330 = vst [vmem:[%s3832_s28] sm:$0xff] %v1300_v27  ;;  %v1303_v14 = vadd.f32 %v3348_v6, %v1238_v1  ;;  %v3309_v4 = vpop.f32.mrb[20].mxu0  ;;  %v1352_v17 = vmul.f32 %v1300_v27, %v1300_v27 }
 0x204   : > { %v3310_v8 = vpop.f32.mrb[21].mxu0 }
 0x205   : > { %1331 = vst [vmem:[%s3832_s28 + $0x8] sm:$0xff] %v1303_v14  ;;  %v1338_v24 = vadd.f32 %v1303_v14, %v1300_v27  ;;  %v1353_v31 = vmul.f32 %v1303_v14, %v1303_v14  ;;  %v3311_v10 = vadd.f32 %v3310_v8, %v3309_v4  ;;  %v3312_v11 = vpop.f32.mrb[22].mxu0  ;;  %v3349_v12 = vpop.f32.mrb[20].mxu1 }
 0x206   : > { %v3313_v39 = vpop.f32.mrb[23].mxu0  ;;  %v3350_v19 = vpop.f32.mrb[21].mxu1 }
 0x207   : > { %v1360_v53 = vadd.f32 %v1353_v31, %v1352_v17  ;;  %v1243_v60 = vadd.f32 %v3311_v10, %v4635_v35  ;;  %v3314_v2 = vadd.f32 %v3313_v39, %v3312_v11  ;;  %v3351_v46 = vadd.f32 %v3350_v19, %v3349_v12  ;;  %v3352_v34 = vpop.f32.mrb[22].mxu1 }
 0x208   : > { %v3353_v54 = vpop.f32.mrb[23].mxu1 }
 0x209   : > { %v1246_v18 = vadd.f32 %v3314_v2, %v4635_v35  ;;  %v1308_v25 = vadd.f32 %v3351_v46, %v1243_v60  ;;  %v3354_v57 = vadd.f32 %v3353_v54, %v3352_v34 }
 0x20b   : > { %1332 = vst [vmem:[%s3832_s28 + $0x10] sm:$0xff] %v1308_v25  ;;  %v1339_v62 = vadd.f32 %v1338_v24, %v1308_v25  ;;  %v1354_v3 = vmul.f32 %v1308_v25, %v1308_v25  ;;  %v1311_v40 = vadd.f32 %v3354_v57, %v1246_v18  ;;  %v3315_v41 = vpop.f32.mrb[24].mxu0 }
 0x20c   : > { %v3316_v22 = vpop.f32.mrb[25].mxu0 }
 0x20d   : > { %v1361_v26 = vadd.f32 %v1360_v53, %v1354_v3  ;;  %1333 = vst [vmem:[%s3832_s28 + $0x18] sm:$0xff] %v1311_v40  ;;  %v1340_v5 = vadd.f32 %v1339_v62, %v1311_v40  ;;  %v1355_v29 = vmul.f32 %v1311_v40, %v1311_v40  ;;  %v3317_v30 = vadd.f32 %v3316_v22, %v3315_v41  ;;  %v3318_v33 = vpop.f32.mrb[26].mxu0  ;;  %v3355_v23 = vpop.f32.mrb[24].mxu1 }
 0x20e   : > { %v3319_v16 = vpop.f32.mrb[27].mxu0  ;;  %v3356_v49 = vpop.f32.mrb[25].mxu1 }
 0x20f   : > { %v1362_v38 = vadd.f32 %v1361_v26, %v1355_v29  ;;  %v1251_v13 = vadd.f32 %v3317_v30, %v4635_v35  ;;  %v3320_v43 = vadd.f32 %v3319_v16, %v3318_v33  ;;  %v3357_v36 = vadd.f32 %v3356_v49, %v3355_v23  ;;  %v3358_v58 = vpop.f32.mrb[26].mxu1 }
 0x210   : > { %v3359_v32 = vpop.f32.mrb[27].mxu1 }
 0x211   : > { %v1254_v44 = vadd.f32 %v3320_v43, %v4635_v35  ;;  %v1316_v48 = vadd.f32 %v3357_v36, %v1251_v13  ;;  %v3360_v52 = vadd.f32 %v3359_v32, %v3358_v58 }
 0x213   : > { %1334 = vst [vmem:[%s3832_s28 + $0x20] sm:$0xff] %v1316_v48  ;;  %v1341_v56 = vadd.f32 %v1340_v5, %v1316_v48  ;;  %v1356_v21 = vmul.f32 %v1316_v48, %v1316_v48  ;;  %v1319_v50 = vadd.f32 %v3360_v52, %v1254_v44  ;;  %v3321_v61 = vpop.f32.mrb[28].mxu0 }
 0x214   : > { %v3322_v9 = vpop.f32.mrb[29].mxu0 }
 0x215   : > { %v1363_v63 = vadd.f32 %v1362_v38, %v1356_v21  ;;  %1335 = vst [vmem:[%s3832_s28 + $0x28] sm:$0xff] %v1319_v50  ;;  %v1342_v51 = vadd.f32 %v1341_v56, %v1319_v50  ;;  %v1357_v0 = vmul.f32 %v1319_v50, %v1319_v50  ;;  %v3323_v15 = vadd.f32 %v3322_v9, %v3321_v61  ;;  %v3324_v7 = vpop.f32.mrb[30].mxu0  ;;  %v3361_v20 = vpop.f32.mrb[28].mxu1 }
 0x216   : > { %v3325_v47 = vpop.f32.mrb[31].mxu0  ;;  %v3362_v28 = vpop.f32.mrb[29].mxu1 }
 0x217   : > { %v1364_v42 = vadd.f32 %v1363_v63, %v1357_v0  ;;  %v1259_v45 = vadd.f32 %v3323_v15, %v4635_v35  ;;  %v3326_v55 = vadd.f32 %v3325_v47, %v3324_v7  ;;  %v3363_v37 = vadd.f32 %v3362_v28, %v3361_v20  ;;  %v3364_v59 = vpop.f32.mrb[30].mxu1 }
 0x218   : > { %v3365_v1 = vpop.f32.mrb[31].mxu1 }
 0x219   : > { %v1262_v27 = vadd.f32 %v3326_v55, %v4635_v35  ;;  %v1324_v6 = vadd.f32 %v3363_v37, %v1259_v45  ;;  %v3366_v14 = vadd.f32 %v3365_v1, %v3364_v59 }
 0x21b   : > { %1336 = vst [vmem:[%s3832_s28 + $0x30] sm:$0xff] %v1324_v6  ;;  %v1343_v4 = vadd.f32 %v1342_v51, %v1324_v6  ;;  %v1358_v8 = vmul.f32 %v1324_v6, %v1324_v6  ;;  %v1327_v17 = vadd.f32 %v3366_v14, %v1262_v27  ;;  %v3383_v24 = vpop.f32.mrb[32].mxu0 }
 0x21c   : > { %v3384_v31 = vpop.f32.mrb[33].mxu0 }
 0x21d   : > { %v1365_v10 = vadd.f32 %v1364_v42, %v1358_v8  ;;  %1337 = vst [vmem:[%s3832_s28 + $0x38] sm:$0xff] %v1327_v17  ;;  %v4653_v11 = vadd.f32 %v1343_v4, %v1327_v17  ;;  %v1359_v12 = vmul.f32 %v1327_v17, %v1327_v17  ;;  %v3385_v39 = vadd.f32 %v3384_v31, %v3383_v24  ;;  %v3386_v19 = vpop.f32.mrb[34].mxu0  ;;  %v3423_v53 = vpop.f32.mrb[32].mxu1 }
 0x21e   : > { %v3387_v60 = vpop.f32.mrb[35].mxu0  ;;  %v3424_v2 = vpop.f32.mrb[33].mxu1 }
 0x21f   : > { %v4655_v46 = vadd.f32 %v1365_v10, %v1359_v12  ;;  %v1717_v34 = vadd.f32 %v3385_v39, %v4635_v35  ;;  %v3388_v54 = vadd.f32 %v3387_v60, %v3386_v19  ;;  %v3426_v18 = vpop.f32.mrb[34].mxu1  ;;  %v3425_v25 = vadd.f32 %v3424_v2, %v3423_v53 }
 0x220   : > { %v3427_v57 = vpop.f32.mrb[35].mxu1  ;;  %v1345_v10 = vrot.slane %v4653_v11, 4 }
 0x221   : > { %v1720_v62 = vadd.f32 %v3388_v54, %v4635_v35  ;;  %v3428_v3 = vadd.f32 %v3427_v57, %v3426_v18  ;;  %v1782_v40 = vadd.f32 %v3425_v25, %v1717_v34  ;;  %v1367_v54 = vrot.slane %v4655_v46, 4 }
 0x223   : > { %v1785_v41 = vadd.f32 %v3428_v3, %v1720_v62  ;;  %v3389_v22 = vpop.f32.mrb[36].mxu0  ;;  %2986 = vst [vmem:[%s3832_s28 + $0x40] sm:$0xff] %v1782_v40  ;;  %v1835_v5 = vmul.f32 %v1782_v40, %v1782_v40 }
 0x224   : > { %v3390_v26 = vpop.f32.mrb[37].mxu0 }
 0x225   : > { %2987 = vst [vmem:[%s3832_s28 + $0x48] sm:$0xff] %v1785_v41  ;;  %v1821_v29 = vadd.f32 %v1785_v41, %v1782_v40  ;;  %v1836_v30 = vmul.f32 %v1785_v41, %v1785_v41  ;;  %v3392_v33 = vpop.f32.mrb[38].mxu0  ;;  %v3429_v23 = vpop.f32.mrb[36].mxu1  ;;  %v3391_v16 = vadd.f32 %v3390_v26, %v3389_v22  ;;  %v1346_v22 = vadd.f32 %v1345_v10, %v4653_v11 }
 0x226   : > { %v3393_v49 = vpop.f32.mrb[39].mxu0  ;;  %v3430_v38 = vpop.f32.mrb[37].mxu1 }
 0x227   : > { %v1843_v13 = vadd.f32 %v1836_v30, %v1835_v5  ;;  %v3394_v43 = vadd.f32 %v3393_v49, %v3392_v33  ;;  %v3432_v36 = vpop.f32.mrb[38].mxu1  ;;  %v1725_v58 = vadd.f32 %v3391_v16, %v4635_v35  ;;  %v3431_v32 = vadd.f32 %v3430_v38, %v3429_v23 }
 0x228   : > { %v3433_v44 = vpop.f32.mrb[39].mxu1  ;;  %v1368_v33 = vadd.f32 %v1367_v54, %v4655_v46 }
 0x229   : > { %v1728_v48 = vadd.f32 %v3394_v43, %v4635_v35  ;;  %v3434_v52 = vadd.f32 %v3433_v44, %v3432_v36  ;;  %v1790_v56 = vadd.f32 %v3431_v32, %v1725_v58 }
 0x22b   : > { %v1793_v21 = vadd.f32 %v3434_v52, %v1728_v48  ;;  %v3395_v50 = vpop.f32.mrb[40].mxu0  ;;  %2988 = vst [vmem:[%s3832_s28 + $0x50] sm:$0xff] %v1790_v56  ;;  %v1822_v61 = vadd.f32 %v1821_v29, %v1790_v56  ;;  %v1837_v9 = vmul.f32 %v1790_v56, %v1790_v56  ;;  %v1369_v52 = vrot.slane %v1368_v33, 2 }
 0x22c   : > { %v3396_v63 = vpop.f32.mrb[41].mxu0 }
 0x22d   : > { %2989 = vst [vmem:[%s3832_s28 + $0x58] sm:$0xff] %v1793_v21  ;;  %v1838_v51 = vmul.f32 %v1793_v21, %v1793_v21  ;;  %v3397_v0 = vadd.f32 %v3396_v63, %v3395_v50  ;;  %v3398_v15 = vpop.f32.mrb[42].mxu0  ;;  %v3435_v7 = vpop.f32.mrb[40].mxu1  ;;  %v1844_v20 = vadd.f32 %v1843_v13, %v1837_v9  ;;  %v1823_v47 = vadd.f32 %v1822_v61, %v1793_v21 }
 0x22e   : > { %v3399_v28 = vpop.f32.mrb[43].mxu0  ;;  %v3436_v42 = vpop.f32.mrb[41].mxu1  ;;  %v1347_v13 = vrot.slane %v1346_v22, 2 }
 0x22f   : > { %v1733_v45 = vadd.f32 %v3397_v0, %v4635_v35  ;;  %v3400_v55 = vadd.f32 %v3399_v28, %v3398_v15  ;;  %v3437_v37 = vadd.f32 %v3436_v42, %v3435_v7  ;;  %v3438_v59 = vpop.f32.mrb[42].mxu1  ;;  %v1845_v1 = vadd.f32 %v1844_v20, %v1838_v51 }
 0x230   : > { %v3439_v27 = vpop.f32.mrb[43].mxu1  ;;  %v1348_v51 = vadd.f32 %v1347_v13, %v1346_v22  ;;  %v1370_v42 = vadd.f32 %v1369_v52, %v1368_v33 }
 0x231   : > { %v1736_v6 = vadd.f32 %v3400_v55, %v4635_v35  ;;  %v1798_v14 = vadd.f32 %v3437_v37, %v1733_v45  ;;  %v3440_v4 = vadd.f32 %v3439_v27, %v3438_v59 }
 0x232   : > { %v1349_v27 = vrot.slane %v1348_v51, 1 }
 0x233   : > { %2990 = vst [vmem:[%s3832_s28 + $0x60] sm:$0xff] %v1798_v14  ;;  %v1824_v8 = vadd.f32 %v1823_v47, %v1798_v14  ;;  %v1839_v17 = vmul.f32 %v1798_v14, %v1798_v14  ;;  %v1801_v24 = vadd.f32 %v3440_v4, %v1736_v6  ;;  %v3401_v31 = vpop.f32.mrb[44].mxu0 }
 0x234   : > { %v3402_v12 = vpop.f32.mrb[45].mxu0 }
 0x235   : > { %v1846_v39 = vadd.f32 %v1845_v1, %v1839_v17  ;;  %2991 = vst [vmem:[%s3832_s28 + $0x68] sm:$0xff] %v1801_v24  ;;  %v1825_v19 = vadd.f32 %v1824_v8, %v1801_v24  ;;  %v1840_v53 = vmul.f32 %v1801_v24, %v1801_v24  ;;  %v3403_v60 = vadd.f32 %v3402_v12, %v3401_v31  ;;  %v3404_v2 = vpop.f32.mrb[46].mxu0  ;;  %v3441_v34 = vpop.f32.mrb[44].mxu1 }
 0x236   : > { %v3405_v18 = vpop.f32.mrb[47].mxu0  ;;  %v3442_v25 = vpop.f32.mrb[45].mxu1  ;;  %v1371_v12 = vrot.slane %v1370_v42, 1 }
 0x237   : > { %v1847_v57 = vadd.f32 %v1846_v39, %v1840_v53  ;;  %v1741_v62 = vadd.f32 %v3403_v60, %v4635_v35  ;;  %v3406_v3 = vadd.f32 %v3405_v18, %v3404_v2  ;;  %v3443_v40 = vadd.f32 %v3442_v25, %v3441_v34  ;;  %v3444_v41 = vpop.f32.mrb[46].mxu1 }
 0x238   : > { %v3445_v26 = vpop.f32.mrb[47].mxu1  ;;  %v1350_v25 = vadd.f32 %v1349_v27, %v1348_v51 }
 0x239   : > { %v1744_v5 = vadd.f32 %v3406_v3, %v4635_v35  ;;  %v1806_v29 = vadd.f32 %v3443_v40, %v1741_v62  ;;  %v3446_v30 = vadd.f32 %v3445_v26, %v3444_v41 }
 0x23b   : > { %2992 = vst [vmem:[%s3832_s28 + $0x70] sm:$0xff] %v1806_v29  ;;  %v1826_v23 = vadd.f32 %v1825_v19, %v1806_v29  ;;  %v1841_v16 = vmul.f32 %v1806_v29, %v1806_v29  ;;  %v1809_v49 = vadd.f32 %v3446_v30, %v1744_v5  ;;  %v3463_v38 = vpop.f32.mrb[48].mxu0  ;;  %v1372_v29 = vadd.f32 %v1371_v12, %v1370_v42 }
 0x23c   : > { %v3464_v43 = vpop.f32.mrb[49].mxu0 }
 0x23d   : > { %v1848_v36 = vadd.f32 %v1847_v57, %v1841_v16  ;;  %2993 = vst [vmem:[%s3832_s28 + $0x78] sm:$0xff] %v1809_v49  ;;  %v1827_v58 = vadd.f32 %v1826_v23, %v1809_v49  ;;  %v1842_v32 = vmul.f32 %v1809_v49, %v1809_v49  ;;  %v3465_v44 = vadd.f32 %v3464_v43, %v3463_v38  ;;  %v3466_v11 = vpop.f32.mrb[50].mxu0  ;;  %v3503_v48 = vpop.f32.mrb[48].mxu1 }
 0x23e   : > { %v3467_v56 = vpop.f32.mrb[51].mxu0  ;;  %v3504_v21 = vpop.f32.mrb[49].mxu1 }
 0x23f   : > { %v1828_v50 = vrot.slane %v1827_v58, 4  ;;  %v1849_v61 = vadd.f32 %v1848_v36, %v1842_v32  ;;  %v2164_v46 = vadd.f32 %v3465_v44, %v4635_v35  ;;  %v3468_v9 = vadd.f32 %v3467_v56, %v3466_v11  ;;  %v3506_v63 = vpop.f32.mrb[50].mxu1 }
 0x240   : > { %v3505_v0 = vadd.f32 %v3504_v21, %v3503_v48  ;;  %v3507_v15 = vpop.f32.mrb[51].mxu1 }
 0x241   : > { %v1829_v7 = vadd.f32 %v1828_v50, %v1827_v58  ;;  %v1850_v20 = vrot.slane %v1849_v61, 4  ;;  %v2167_v47 = vadd.f32 %v3468_v9, %v4635_v35  ;;  %v3508_v28 = vadd.f32 %v3507_v15, %v3506_v63 }
 0x242   : > { %v2229_v45 = vadd.f32 %v3505_v0, %v2164_v46 }
 0x243   : > { %v1830_v55 = vrot.slane %v1829_v7, 2  ;;  %v1851_v37 = vadd.f32 %v1850_v20, %v1849_v61  ;;  %v2232_v59 = vadd.f32 %v3508_v28, %v2167_v47  ;;  %v3469_v1 = vpop.f32.mrb[52].mxu0 }
 0x244   : > { %3091 = vst [vmem:[%s3832_s28 + $0x80] sm:$0xff] %v2229_v45  ;;  %v2282_v6 = vmul.f32 %v2229_v45, %v2229_v45  ;;  %v3470_v14 = vpop.f32.mrb[53].mxu0 }
 0x245   : > { %v1831_v4 = vadd.f32 %v1830_v55, %v1829_v7  ;;  %v1852_v8 = vrot.slane %v1851_v37, 2  ;;  %3092 = vst [vmem:[%s3832_s28 + $0x88] sm:$0xff] %v2232_v59  ;;  %v2268_v17 = vadd.f32 %v2232_v59, %v2229_v45  ;;  %v2283_v24 = vmul.f32 %v2232_v59, %v2232_v59  ;;  %v3472_v31 = vpop.f32.mrb[54].mxu0  ;;  %v3509_v10 = vpop.f32.mrb[52].mxu1 }
 0x246   : > { %v3471_v39 = vadd.f32 %v3470_v14, %v3469_v1  ;;  %v3473_v19 = vpop.f32.mrb[55].mxu0  ;;  %v3510_v53 = vpop.f32.mrb[53].mxu1 }
 0x247   : > { %v1832_v60 = vrot.slane %v1831_v4, 1  ;;  %v1853_v2 = vadd.f32 %v1852_v8, %v1851_v37  ;;  %v2290_v34 = vadd.f32 %v2283_v24, %v2282_v6  ;;  %v3474_v54 = vadd.f32 %v3473_v19, %v3472_v31  ;;  %v3512_v18 = vpop.f32.mrb[54].mxu1 }
 0x248   : > { %v2172_v57 = vadd.f32 %v3471_v39, %v4635_v35  ;;  %v3511_v62 = vadd.f32 %v3510_v53, %v3509_v10  ;;  %v3513_v3 = vpop.f32.mrb[55].mxu1 }
 0x249   : > { %v1833_v40 = vadd.f32 %v1832_v60, %v1831_v4  ;;  %v1854_v41 = vrot.slane %v1853_v2, 1  ;;  %v2175_v22 = vadd.f32 %v3474_v54, %v4635_v35  ;;  %v3514_v26 = vadd.f32 %v3513_v3, %v3512_v18 }
 0x24a   : > { %v2237_v5 = vadd.f32 %v3511_v62, %v2172_v57 }
 0x24b   : > { %v4683_v30 = vadd.f32 %v1833_v40, %v1350_v25  ;;  %v1855_v33 = vadd.f32 %v1854_v41, %v1853_v2  ;;  %v2240_v23 = vadd.f32 %v3514_v26, %v2175_v22  ;;  %v3475_v16 = vpop.f32.mrb[56].mxu0 }
 0x24c   : > { %3093 = vst [vmem:[%s3832_s28 + $0x90] sm:$0xff] %v2237_v5  ;;  %v2269_v49 = vadd.f32 %v2268_v17, %v2237_v5  ;;  %v2284_v38 = vmul.f32 %v2237_v5, %v2237_v5  ;;  %v3476_v13 = vpop.f32.mrb[57].mxu0 }
 0x24d   : > { %v4686_v43 = vadd.f32 %v1855_v33, %v1372_v29  ;;  %3094 = vst [vmem:[%s3832_s28 + $0x98] sm:$0xff] %v2240_v23  ;;  %v2285_v36 = vmul.f32 %v2240_v23, %v2240_v23  ;;  %v3477_v58 = vadd.f32 %v3476_v13, %v3475_v16  ;;  %v3478_v32 = vpop.f32.mrb[58].mxu0  ;;  %v3515_v44 = vpop.f32.mrb[56].mxu1 }
 0x24e   : > { %v2291_v11 = vadd.f32 %v2290_v34, %v2284_v38  ;;  %v2270_v48 = vadd.f32 %v2269_v49, %v2240_v23  ;;  %v3479_v52 = vpop.f32.mrb[59].mxu0  ;;  %v3516_v56 = vpop.f32.mrb[57].mxu1 }
 0x24f   : > { %v2180_v21 = vadd.f32 %v3477_v58, %v4635_v35  ;;  %v3480_v50 = vadd.f32 %v3479_v52, %v3478_v32  ;;  %v3517_v61 = vadd.f32 %v3516_v56, %v3515_v44  ;;  %v3518_v46 = vpop.f32.mrb[58].mxu1 }
 0x250   : > { %v2292_v9 = vadd.f32 %v2291_v11, %v2285_v36  ;;  %v3519_v63 = vpop.f32.mrb[59].mxu1 }
 0x251   : > { %v2183_v51 = vadd.f32 %v3480_v50, %v4635_v35  ;;  %v2245_v0 = vadd.f32 %v3517_v61, %v2180_v21  ;;  %v3520_v15 = vadd.f32 %v3519_v63, %v3518_v46 }
 0x253   : > { %3095 = vst [vmem:[%s3832_s28 + $0xa0] sm:$0xff] %v2245_v0  ;;  %v2271_v7 = vadd.f32 %v2270_v48, %v2245_v0  ;;  %v2286_v20 = vmul.f32 %v2245_v0, %v2245_v0  ;;  %v2248_v47 = vadd.f32 %v3520_v15, %v2183_v51  ;;  %v3481_v28 = vpop.f32.mrb[60].mxu0 }
 0x254   : > { %v3482_v42 = vpop.f32.mrb[61].mxu0 }
 0x255   : > { %v2293_v45 = vadd.f32 %v2292_v9, %v2286_v20  ;;  %3096 = vst [vmem:[%s3832_s28 + $0xa8] sm:$0xff] %v2248_v47  ;;  %v2272_v55 = vadd.f32 %v2271_v7, %v2248_v47  ;;  %v2287_v37 = vmul.f32 %v2248_v47, %v2248_v47  ;;  %v3483_v59 = vadd.f32 %v3482_v42, %v3481_v28  ;;  %v3484_v1 = vpop.f32.mrb[62].mxu0  ;;  %v3521_v27 = vpop.f32.mrb[60].mxu1 }
 0x256   : > { %v3485_v6 = vpop.f32.mrb[63].mxu0  ;;  %v3522_v14 = vpop.f32.mrb[61].mxu1 }
 0x257   : > { %v2294_v4 = vadd.f32 %v2293_v45, %v2287_v37  ;;  %v2188_v8 = vadd.f32 %v3483_v59, %v4635_v35  ;;  %v3486_v17 = vadd.f32 %v3485_v6, %v3484_v1  ;;  %v3523_v24 = vadd.f32 %v3522_v14, %v3521_v27  ;;  %v3524_v31 = vpop.f32.mrb[62].mxu1 }
 0x258   : > { %v3525_v10 = vpop.f32.mrb[63].mxu1 }
 0x259   : > { %v2191_v12 = vadd.f32 %v3486_v17, %v4635_v35  ;;  %v2253_v39 = vadd.f32 %v3523_v24, %v2188_v8  ;;  %v3526_v19 = vadd.f32 %v3525_v10, %v3524_v31 }
 0x25b   : > { %3097 = vst [vmem:[%s3832_s28 + $0xb0] sm:$0xff] %v2253_v39  ;;  %v2273_v53 = vadd.f32 %v2272_v55, %v2253_v39  ;;  %v2288_v60 = vmul.f32 %v2253_v39, %v2253_v39  ;;  %v2256_v2 = vadd.f32 %v3526_v19, %v2191_v12  ;;  %v3543_v34 = vpop.f32.mrb[64].mxu0 }
 0x25c   : > { %v3544_v54 = vpop.f32.mrb[65].mxu0 }
 0x25d   : > { %v2295_v18 = vadd.f32 %v2294_v4, %v2288_v60  ;;  %3098 = vst [vmem:[%s3832_s28 + $0xb8] sm:$0xff] %v2256_v2  ;;  %v2274_v25 = vadd.f32 %v2273_v53, %v2256_v2  ;;  %v2289_v57 = vmul.f32 %v2256_v2, %v2256_v2  ;;  %v3545_v62 = vadd.f32 %v3544_v54, %v3543_v34  ;;  %v3546_v3 = vpop.f32.mrb[66].mxu0  ;;  %v3583_v40 = vpop.f32.mrb[64].mxu1 }
 0x25e   : > { %v3547_v41 = vpop.f32.mrb[67].mxu0  ;;  %v3584_v22 = vpop.f32.mrb[65].mxu1 }
 0x25f   : > { %v2275_v26 = vrot.slane %v2274_v25, 4  ;;  %v2296_v5 = vadd.f32 %v2295_v18, %v2289_v57  ;;  %v2608_v29 = vadd.f32 %v3545_v62, %v4635_v35  ;;  %v3548_v33 = vadd.f32 %v3547_v41, %v3546_v3  ;;  %v3586_v23 = vpop.f32.mrb[66].mxu1 }
 0x260   : > { %v3585_v16 = vadd.f32 %v3584_v22, %v3583_v40  ;;  %v3587_v49 = vpop.f32.mrb[67].mxu1 }
 0x261   : > { %v2276_v38 = vadd.f32 %v2275_v26, %v2274_v25  ;;  %v2297_v13 = vrot.slane %v2296_v5, 4  ;;  %v2611_v36 = vadd.f32 %v3548_v33, %v4635_v35  ;;  %v3588_v58 = vadd.f32 %v3587_v49, %v3586_v23 }
 0x262   : > { %v2673_v32 = vadd.f32 %v3585_v16, %v2608_v29 }
 0x263   : > { %v2277_v44 = vrot.slane %v2276_v38, 2  ;;  %v2298_v11 = vadd.f32 %v2297_v13, %v2296_v5  ;;  %v2676_v48 = vadd.f32 %v3588_v58, %v2611_v36  ;;  %v3549_v52 = vpop.f32.mrb[68].mxu0 }
 0x264   : > { %3196 = vst [vmem:[%s3832_s28 + $0xc0] sm:$0xff] %v2673_v32  ;;  %v2726_v56 = vmul.f32 %v2673_v32, %v2673_v32  ;;  %v3550_v21 = vpop.f32.mrb[69].mxu0 }
 0x265   : > { %v2278_v50 = vadd.f32 %v2277_v44, %v2276_v38  ;;  %v2299_v61 = vrot.slane %v2298_v11, 2  ;;  %3197 = vst [vmem:[%s3832_s28 + $0xc8] sm:$0xff] %v2676_v48  ;;  %v2712_v46 = vadd.f32 %v2676_v48, %v2673_v32  ;;  %v2727_v9 = vmul.f32 %v2676_v48, %v2676_v48  ;;  %v3552_v63 = vpop.f32.mrb[70].mxu0  ;;  %v3589_v51 = vpop.f32.mrb[68].mxu1 }
 0x266   : > { %v3551_v0 = vadd.f32 %v3550_v21, %v3549_v52  ;;  %v3553_v15 = vpop.f32.mrb[71].mxu0  ;;  %v3590_v7 = vpop.f32.mrb[69].mxu1 }
 0x267   : > { %v2279_v20 = vrot.slane %v2278_v50, 1  ;;  %v2300_v47 = vadd.f32 %v2299_v61, %v2298_v11  ;;  %v2734_v28 = vadd.f32 %v2727_v9, %v2726_v56  ;;  %v3554_v42 = vadd.f32 %v3553_v15, %v3552_v63  ;;  %v3592_v45 = vpop.f32.mrb[70].mxu1 }
 0x268   : > { %v2616_v55 = vadd.f32 %v3551_v0, %v4635_v35  ;;  %v3591_v37 = vadd.f32 %v3590_v7, %v3589_v51  ;;  %v3593_v59 = vpop.f32.mrb[71].mxu1 }
 0x269   : > { %v2280_v1 = vadd.f32 %v2279_v20, %v2278_v50  ;;  %v2301_v27 = vrot.slane %v2300_v47, 1  ;;  %v2619_v6 = vadd.f32 %v3554_v42, %v4635_v35  ;;  %v3594_v14 = vadd.f32 %v3593_v59, %v3592_v45 }
 0x26a   : > { %v2681_v4 = vadd.f32 %v3591_v37, %v2616_v55 }
 0x26b   : > { %v4704_v8 = vadd.f32 %v2280_v1, %v4683_v30  ;;  %v2302_v17 = vadd.f32 %v2301_v27, %v2300_v47  ;;  %v2684_v24 = vadd.f32 %v3594_v14, %v2619_v6  ;;  %v3555_v31 = vpop.f32.mrb[72].mxu0 }
 0x26c   : > { %3198 = vst [vmem:[%s3832_s28 + $0xd0] sm:$0xff] %v2681_v4  ;;  %v2713_v10 = vadd.f32 %v2712_v46, %v2681_v4  ;;  %v2728_v12 = vmul.f32 %v2681_v4, %v2681_v4  ;;  %v3556_v39 = vpop.f32.mrb[73].mxu0 }
 0x26d   : > { %v4708_v19 = vadd.f32 %v2302_v17, %v4686_v43  ;;  %3199 = vst [vmem:[%s3832_s28 + $0xd8] sm:$0xff] %v2684_v24  ;;  %v2729_v53 = vmul.f32 %v2684_v24, %v2684_v24  ;;  %v3557_v60 = vadd.f32 %v3556_v39, %v3555_v31  ;;  %v3558_v2 = vpop.f32.mrb[74].mxu0  ;;  %v3595_v34 = vpop.f32.mrb[72].mxu1 }
 0x26e   : > { %v2735_v54 = vadd.f32 %v2734_v28, %v2728_v12  ;;  %v2714_v18 = vadd.f32 %v2713_v10, %v2684_v24  ;;  %v3559_v30 = vpop.f32.mrb[75].mxu0  ;;  %v3596_v25 = vpop.f32.mrb[73].mxu1  ;;  %v2748_v12 = vld [vmem:[%s4736_s6] sm:$0x3] }
 0x26f   : > { %v2624_v57 = vadd.f32 %v3557_v60, %v4635_v35  ;;  %v3560_v62 = vadd.f32 %v3559_v30, %v3558_v2  ;;  %v3597_v3 = vadd.f32 %v3596_v25, %v3595_v34  ;;  %v3598_v40 = vpop.f32.mrb[74].mxu1 }
 0x270   : > { %v2736_v41 = vadd.f32 %v2735_v54, %v2729_v53  ;;  %v3599_v22 = vpop.f32.mrb[75].mxu1 }
 0x271   : > { %v2627_v43 = vadd.f32 %v3560_v62, %v4635_v35  ;;  %v2689_v26 = vadd.f32 %v3597_v3, %v2624_v57  ;;  %v3600_v5 = vadd.f32 %v3599_v22, %v3598_v40 }
 0x273   : > { %3200 = vst [vmem:[%s3832_s28 + $0xe0] sm:$0xff] %v2689_v26  ;;  %v2715_v29 = vadd.f32 %v2714_v18, %v2689_v26  ;;  %v2730_v33 = vmul.f32 %v2689_v26, %v2689_v26  ;;  %v2692_v23 = vadd.f32 %v3600_v5, %v2627_v43  ;;  %v3561_v16 = vpop.f32.mrb[76].mxu0 }
 0x274   : > { %v3562_v49 = vpop.f32.mrb[77].mxu0 }
 0x275   : > { %v2737_v38 = vadd.f32 %v2736_v41, %v2730_v33  ;;  %3201 = vst [vmem:[%s3832_s28 + $0xe8] sm:$0xff] %v2692_v23  ;;  %v2716_v13 = vadd.f32 %v2715_v29, %v2692_v23  ;;  %v2731_v36 = vmul.f32 %v2692_v23, %v2692_v23  ;;  %v3563_v58 = vadd.f32 %v3562_v49, %v3561_v16  ;;  %v3564_v32 = vpop.f32.mrb[78].mxu0  ;;  %v3601_v44 = vpop.f32.mrb[76].mxu1 }
 0x276   : > { %v3565_v11 = vpop.f32.mrb[79].mxu0  ;;  %v3602_v48 = vpop.f32.mrb[77].mxu1 }
 0x277   : > { %v2738_v52 = vadd.f32 %v2737_v38, %v2731_v36  ;;  %v2632_v56 = vadd.f32 %v3563_v58, %v4635_v35  ;;  %v3566_v21 = vadd.f32 %v3565_v11, %v3564_v32  ;;  %v3603_v50 = vadd.f32 %v3602_v48, %v3601_v44  ;;  %v3604_v61 = vpop.f32.mrb[78].mxu1 }
 0x278   : > { %v3605_v46 = vpop.f32.mrb[79].mxu1 }
 0x279   : > { %v2635_v9 = vadd.f32 %v3566_v21, %v4635_v35  ;;  %v2697_v63 = vadd.f32 %v3603_v50, %v2632_v56  ;;  %v3606_v51 = vadd.f32 %v3605_v46, %v3604_v61 }
 0x27b   : > { %3202 = vst [vmem:[%s3832_s28 + $0xf0] sm:$0xff] %v2697_v63  ;;  %v2717_v0 = vadd.f32 %v2716_v13, %v2697_v63  ;;  %v2732_v15 = vmul.f32 %v2697_v63, %v2697_v63  ;;  %v2700_v7 = vadd.f32 %v3606_v51, %v2635_v9 }
 0x27d   : > { %v2739_v20 = vadd.f32 %v2738_v52, %v2732_v15  ;;  %3203 = vst [vmem:[%s3832_s28 + $0xf8] sm:$0xff] %v2700_v7  ;;  %v2718_v47 = vadd.f32 %v2717_v0, %v2700_v7  ;;  %v2733_v28 = vmul.f32 %v2700_v7, %v2700_v7 }
 0x27f   : > { %v2719_v42 = vrot.slane %v2718_v47, 4  ;;  %v2740_v45 = vadd.f32 %v2739_v20, %v2733_v28 }
 0x281   : > { %v2720_v55 = vadd.f32 %v2719_v42, %v2718_v47  ;;  %v2741_v37 = vrot.slane %v2740_v45, 4 }
 0x283   : > { %v2721_v59 = vrot.slane %v2720_v55, 2  ;;  %v2742_v1 = vadd.f32 %v2741_v37, %v2740_v45 }
 0x285   : > { %v2722_v27 = vadd.f32 %v2721_v59, %v2720_v55  ;;  %v2743_v6 = vrot.slane %v2742_v1, 2 }
 0x287   : > { %v2723_v14 = vrot.slane %v2722_v27, 1  ;;  %v2744_v35 = vadd.f32 %v2743_v6, %v2742_v1 }
 0x289   : > { %v2724_v4 = vadd.f32 %v2723_v14, %v2722_v27  ;;  %v2745_v17 = vrot.slane %v2744_v35, 1 }
 0x28b   : > { %v2725_v24 = vadd.f32 %v2724_v4, %v4704_v8  ;;  %v2746_v31 = vadd.f32 %v2745_v17, %v2744_v35 }
 0x28d   : > { %v2747_v10 = vadd.f32 %v2746_v31, %v4708_v19 }
 0x28f   : > { %v2750_v39 = vsel %vm2749_vm0, %v2725_v24, %v2747_v10 }
 0x290   : > { %v2751_v53 = vadd.f32 %v2750_v39, %v2748_v12 }
 0x292   : > { %2752 = vst [vmem:[%s4736_s6] sm:$0x3] %v2751_v53 }
 0x293 PF: > { %s17_s21 = sadd.s32 1, %s3783_s21  }
 0x294   : > { %p14_p5 = scmp.ge.s32.totalorder %s17_s21, 4  }
 0x296   :  { %16 = sbr.rel (!%p14_p5) target bundleno = 1 (0x1), region = 89 }

</bundles_post_ra>
